<compile_context>
chip_gen: v7x
topology: tpu7x:2x2x1
jax: 0.10.0
libtpu: 0.0.40
codegen_flags: <defaults>
</compile_context>

<pallas_src>
import functools

import jax
import jax.numpy as jnp
import numpy as np
from jax.experimental import pallas as pl
from jax.experimental.pallas import tpu as pltpu


def lstm_only_last_kernel(x_ref, whh_ref, params_ref, out_ref, *,
                          hidden_size, seq_len):
    """Full LSTM recurrence + final Linear in one kernel invocation.

    x_ref:      (T, B, 1)  f32 input sequence (input_size == 1), time-major
    whh_ref:    (H, 4H)    bf16 hidden->gate weights (g-gate columns pre-scaled by 2)
    params_ref: (4, 4H)    f32 packed loop-invariant params:
                             row 0: w_ih row      (g-gate cols pre-scaled by 2)
                             row 1: b_ih + b_hh   (g-gate cols pre-scaled by 2)
                             row 2: linear weight (first H lanes, rest zero)
                             row 3: linear bias   (lane 0, rest zero)
    out_ref:    (B, 1)     f32
    """
    _, B, _ = x_ref.shape
    H = hidden_size

    whh = whh_ref[...]                          # (H, 4H) bf16, loop-invariant MXU RHS
    wih = params_ref[0:1, :]                    # (1, 4H)
    b = params_ref[1:2, :]                      # (1, 4H)

    h = jnp.zeros((B, H), jnp.float32)
    c = jnp.zeros((B, H), jnp.float32)

    # Fully-unrolled recurrence (T is static): one basic block, full LLO visibility.
    for t in range(seq_len):
        # Per-step input contribution (VPU work that overlaps MXU/EUP latency).
        gx = x_ref[t] * wih + b                                       # (B, 4H) f32
        # Recurrent contribution: bf16 x bf16 -> f32 accumulation on the MXU.
        gates = gx + jnp.dot(h.astype(jnp.bfloat16), whh,
                             preferred_element_type=jnp.float32)      # (B, 4H) f32
        # ONE full-lane-width sigmoid (EUP); tanh recovered as 2*sigmoid(2z) - 1.
        s = jax.nn.sigmoid(gates)
        # Explicit XLU lane-rolls + prefix slices for gate extraction (no VMEM copies).
        i_g = s[:, :H]                                                # == s[:, 0:H]
        f_g = pltpu.roll(s, 3 * H, axis=1)[:, :H]                     # == s[:, H:2H]
        g_g = pltpu.roll(s, 2 * H, axis=1)[:, :H]                     # == s[:, 2H:3H]
        o_g = pltpu.roll(s, H, axis=1)[:, :H]                         # == s[:, 3H:4H]
        g = 2.0 * g_g - 1.0                                           # tanh(z_g)
        c = f_g * c + i_g * g
        h = o_g * jnp.tanh(c)

    # Final Linear(H, 1) on the last hidden state: VPU mul + XLU lane reduction.
    wlin = params_ref[2:3, :H]                  # (1, H)
    blin = params_ref[3:4, 0:1]                 # (1, 1)
    out_ref[...] = jnp.sum(h * wlin, axis=-1, keepdims=True) + blin   # (B, 1)


def lstm_only_last(x, w_ih, w_hh, b_ih, b_hh, w_lin, b_lin):
    """x: (B, T, 1) float32. Returns (B, 1, 1) float32, matching the PyTorch module."""
    B, T, _ = x.shape
    H = w_hh.shape[1]                           # torch layout: weight_hh_l0 is (4H, H)
    G = 4 * H

    # ---- One-time weight prep in XLA (outside the serial kernel). ----
    x_tb1 = jnp.transpose(x.astype(jnp.float32), (1, 0, 2))           # (T, B, 1)

    # tanh-via-sigmoid: pre-scale the g-gate (columns [2H, 3H)) pre-activations by 2.
    gate_scale = jnp.concatenate(
        [jnp.ones((2 * H,), jnp.float32),
         jnp.full((H,), 2.0, jnp.float32),
         jnp.ones((H,), jnp.float32)])                                 # (4H,)

    wih_row = w_ih.reshape(G).astype(jnp.float32) * gate_scale         # (4H,)
    bias_row = (b_ih + b_hh).astype(jnp.float32) * gate_scale          # (4H,)
    wlin_row = jnp.zeros((G,), jnp.float32).at[:H].set(
        w_lin.reshape(H).astype(jnp.float32))                          # (4H,)
    blin_row = jnp.zeros((G,), jnp.float32).at[0].set(
        b_lin.reshape(()).astype(jnp.float32))                         # (4H,)
    params = jnp.stack([wih_row, bias_row, wlin_row, blin_row])        # (4, 4H) f32

    # Recurrent weights as bf16 MXU operands (f32 accumulation in the kernel).
    whh_bf16 = (w_hh.T.astype(jnp.float32) * gate_scale[None, :]).astype(jnp.bfloat16)

    # NOTE: here 4H is an exact multiple of 128 and B a multiple of 8, so the packed
    # gates vreg is lane-dense.  For other H (e.g. the PyTorch default 50), pad the
    # gate columns of W_hh / params to the next 128-lane multiple in this wrapper.

    kernel = functools.partial(lstm_only_last_kernel, hidden_size=H, seq_len=T)
    out2d = pl.pallas_call(
        kernel,
        out_shape=jax.ShapeDtypeStruct((B, 1), jnp.float32),
        in_specs=[pl.BlockSpec(memory_space=pltpu.MemorySpace.VMEM)] * 3,
        out_specs=pl.BlockSpec(memory_space=pltpu.MemorySpace.VMEM),
    )(x_tb1, whh_bf16, params)

    return out2d.reshape(B, 1, 1)


def _reference(x, w_ih, w_hh, b_ih, b_hh, w_lin, b_lin):
    """Float64 numpy reference matching torch.nn.LSTM semantics (gate order i,f,g,o)."""
    x = np.asarray(x, np.float64)
    w_ih = np.asarray(w_ih, np.float64)
    w_hh = np.asarray(w_hh, np.float64)
    b_ih = np.asarray(b_ih, np.float64)
    b_hh = np.asarray(b_hh, np.float64)
    w_lin = np.asarray(w_lin, np.float64)
    b_lin = np.asarray(b_lin, np.float64)
    sigmoid = lambda z: 1.0 / (1.0 + np.exp(-z))

    B, T, _ = x.shape
    H = w_hh.shape[1]
    h = np.zeros((B, H), np.float64)
    c = np.zeros((B, H), np.float64)
    for t in range(T):
        gates = x[:, t, :] @ w_ih.T + h @ w_hh.T + b_ih + b_hh        # (B, 4H)
        i = sigmoid(gates[:, 0:H])
        f = sigmoid(gates[:, H:2 * H])
        g = np.tanh(gates[:, 2 * H:3 * H])
        o = sigmoid(gates[:, 3 * H:4 * H])
        c = f * c + i * g
        h = o * np.tanh(c)
    out = h @ w_lin.T + b_lin                                          # (B, 1)
    return out[:, :, None]                                             # (B, 1, 1)


if __name__ == "__main__":
    B, T, H = 8, 16, 32                         # small shapes; input_size = 1

    key = jax.random.PRNGKey(0)
    ks = jax.random.split(key, 8)
    bound = 1.0 / np.sqrt(H)                    # PyTorch default init range
    init = lambda k, shape: jax.random.uniform(k, shape, jnp.float32, -bound, bound)

    x = jax.random.normal(ks[0], (B, T, 1), jnp.float32)
    w_ih = init(ks[1], (4 * H, 1))              # weight_ih_l0
    w_hh = init(ks[2], (4 * H, H))              # weight_hh_l0
    b_ih = init(ks[3], (4 * H,))                # bias_ih_l0
    b_hh = init(ks[4], (4 * H,))                # bias_hh_l0
    w_lin = init(ks[5], (1, H))                 # linear.weight
    b_lin = init(ks[6], (1,))                   # linear.bias

    out = lstm_only_last(x, w_ih, w_hh, b_ih, b_hh, w_lin, b_lin)
    out = jax.block_until_ready(out)

    ref = _reference(x, w_ih, w_hh, b_ih, b_hh, w_lin, b_lin)
    assert out.shape == (B, 1, 1), out.shape
    # The recurrent matmul uses bf16 operands with f32 accumulation (per perf
    # feedback); vs. the float64 reference this yields roughly 1e-3 absolute
    # deviation over the 16-step recurrence, so the tolerance reflects bf16 numerics.
    np.testing.assert_allclose(np.asarray(out), ref, rtol=2e-2, atol=5e-3)

    print("KERNEL_OK")
</pallas_src>

<mosaic_0001>
module attributes {stable_mosaic.version = 11 : i64} {
  func.func @lstm_only_last_kernel(%arg0: memref<16x8x1xf32, #tpu.memory_space<vmem>>, %arg1: memref<32x128xbf16, #tpu.memory_space<vmem>>, %arg2: memref<4x128xf32, #tpu.memory_space<vmem>>, %arg3: memref<8x1xf32, #tpu.memory_space<vmem>>) attributes {dimension_semantics = [], scalar_prefetch = 0 : i64, scratch_operands = 0 : i64, tpu.core_type = #tpu.core_type<tc>} {
    %c0 = arith.constant 0 : index
    %c0_0 = arith.constant 0 : index
    %0 = vector.load %arg1[%c0, %c0_0] : memref<32x128xbf16, #tpu.memory_space<vmem>>, vector<32x128xbf16>
    %c0_1 = arith.constant 0 : index
    %c0_2 = arith.constant 0 : index
    %1 = vector.load %arg2[%c0_1, %c0_2] : memref<4x128xf32, #tpu.memory_space<vmem>>, vector<1x128xf32>
    %c1 = arith.constant 1 : index
    %c0_3 = arith.constant 0 : index
    %2 = vector.load %arg2[%c1, %c0_3] : memref<4x128xf32, #tpu.memory_space<vmem>>, vector<1x128xf32>
    %cst = arith.constant 0.000000e+00 : f32
    %3 = vector.broadcast %cst : f32 to vector<8x32xf32>
    %cst_4 = arith.constant 0.000000e+00 : f32
    %4 = vector.broadcast %cst_4 : f32 to vector<8x32xf32>
    %c0_5 = arith.constant 0 : index
    %c0_6 = arith.constant 0 : index
    %c0_7 = arith.constant 0 : index
    %5 = vector.load %arg0[%c0_5, %c0_6, %c0_7] : memref<16x8x1xf32, #tpu.memory_space<vmem>>, vector<1x8x1xf32>
    %6 = vector.shape_cast %5 : vector<1x8x1xf32> to vector<8x1xf32>
    %7 = vector.broadcast %6 : vector<8x1xf32> to vector<8x128xf32>
    %8 = vector.broadcast %1 : vector<1x128xf32> to vector<8x128xf32>
    %9 = arith.mulf %7, %8 : vector<8x128xf32>
    %10 = vector.broadcast %2 : vector<1x128xf32> to vector<8x128xf32>
    %11 = arith.addf %9, %10 : vector<8x128xf32>
    %12 = arith.truncf %3 : vector<8x32xf32> to vector<8x32xbf16>
    %cst_8 = arith.constant dense<0.000000e+00> : vector<8x128xf32>
    %13 = tpu.matmul %12, %0, %cst_8 {dimension_numbers = #tpu.dot_dimension_numbers<[1], [0], [0], [1], [0, 0, 1, 1], [], []>} : vector<8x32xbf16>, vector<32x128xbf16>, vector<8x128xf32> -> vector<8x128xf32>
    %14 = arith.addf %11, %13 : vector<8x128xf32>
    %15 = arith.negf %14 : vector<8x128xf32>
    %16 = math.exp %15 : vector<8x128xf32>
    %cst_9 = arith.constant 1.000000e+00 : f32
    %17 = vector.broadcast %cst_9 : f32 to vector<8x128xf32>
    %18 = arith.addf %17, %16 : vector<8x128xf32>
    %19 = arith.divf %17, %18 : vector<8x128xf32>
    %20 = vector.extract_strided_slice %19 {offsets = [0, 0], sizes = [8, 32], strides = [1, 1]} : vector<8x128xf32> to vector<8x32xf32>
    %c96_i32 = arith.constant 96 : i32
    %21 = tpu.dynamic_rotate %19 by %c96_i32 dim 1 : vector<8x128xf32>, i32 -> vector<8x128xf32>
    %22 = vector.extract_strided_slice %21 {offsets = [0, 0], sizes = [8, 32], strides = [1, 1]} : vector<8x128xf32> to vector<8x32xf32>
    %c64_i32 = arith.constant 64 : i32
    %23 = tpu.dynamic_rotate %19 by %c64_i32 dim 1 : vector<8x128xf32>, i32 -> vector<8x128xf32>
    %24 = vector.extract_strided_slice %23 {offsets = [0, 0], sizes = [8, 32], strides = [1, 1]} : vector<8x128xf32> to vector<8x32xf32>
    %c32_i32 = arith.constant 32 : i32
    %25 = tpu.dynamic_rotate %19 by %c32_i32 dim 1 : vector<8x128xf32>, i32 -> vector<8x128xf32>
    %26 = vector.extract_strided_slice %25 {offsets = [0, 0], sizes = [8, 32], strides = [1, 1]} : vector<8x128xf32> to vector<8x32xf32>
    %cst_10 = arith.constant 2.000000e+00 : f32
    %27 = vector.broadcast %cst_10 : f32 to vector<8x32xf32>
    %28 = arith.mulf %27, %24 : vector<8x32xf32>
    %cst_11 = arith.constant 1.000000e+00 : f32
    %29 = vector.broadcast %cst_11 : f32 to vector<8x32xf32>
    %30 = arith.subf %28, %29 : vector<8x32xf32>
    %31 = arith.mulf %22, %4 : vector<8x32xf32>
    %32 = arith.mulf %20, %30 : vector<8x32xf32>
    %33 = arith.addf %31, %32 : vector<8x32xf32>
    %34 = math.tanh %33 : vector<8x32xf32>
    %35 = arith.mulf %26, %34 : vector<8x32xf32>
    %c1_12 = arith.constant 1 : index
    %c0_13 = arith.constant 0 : index
    %c0_14 = arith.constant 0 : index
    %36 = vector.load %arg0[%c1_12, %c0_13, %c0_14] : memref<16x8x1xf32, #tpu.memory_space<vmem>>, vector<1x8x1xf32>
    %37 = vector.shape_cast %36 : vector<1x8x1xf32> to vector<8x1xf32>
    %38 = vector.broadcast %37 : vector<8x1xf32> to vector<8x128xf32>
    %39 = vector.broadcast %1 : vector<1x128xf32> to vector<8x128xf32>
    %40 = arith.mulf %38, %39 : vector<8x128xf32>
    %41 = vector.broadcast %2 : vector<1x128xf32> to vector<8x128xf32>
    %42 = arith.addf %40, %41 : vector<8x128xf32>
    %43 = arith.truncf %35 : vector<8x32xf32> to vector<8x32xbf16>
    %cst_15 = arith.constant dense<0.000000e+00> : vector<8x128xf32>
    %44 = tpu.matmul %43, %0, %cst_15 {dimension_numbers = #tpu.dot_dimension_numbers<[1], [0], [0], [1], [0, 0, 1, 1], [], []>} : vector<8x32xbf16>, vector<32x128xbf16>, vector<8x128xf32> -> vector<8x128xf32>
    %45 = arith.addf %42, %44 : vector<8x128xf32>
    %46 = arith.negf %45 : vector<8x128xf32>
    %47 = math.exp %46 : vector<8x128xf32>
    %cst_16 = arith.constant 1.000000e+00 : f32
    %48 = vector.broadcast %cst_16 : f32 to vector<8x128xf32>
    %49 = arith.addf %48, %47 : vector<8x128xf32>
    %50 = arith.divf %48, %49 : vector<8x128xf32>
    %51 = vector.extract_strided_slice %50 {offsets = [0, 0], sizes = [8, 32], strides = [1, 1]} : vector<8x128xf32> to vector<8x32xf32>
    %c96_i32_17 = arith.constant 96 : i32
    %52 = tpu.dynamic_rotate %50 by %c96_i32_17 dim 1 : vector<8x128xf32>, i32 -> vector<8x128xf32>
    %53 = vector.extract_strided_slice %52 {offsets = [0, 0], sizes = [8, 32], strides = [1, 1]} : vector<8x128xf32> to vector<8x32xf32>
    %c64_i32_18 = arith.constant 64 : i32
    %54 = tpu.dynamic_rotate %50 by %c64_i32_18 dim 1 : vector<8x128xf32>, i32 -> vector<8x128xf32>
    %55 = vector.extract_strided_slice %54 {offsets = [0, 0], sizes = [8, 32], strides = [1, 1]} : vector<8x128xf32> to vector<8x32xf32>
    %c32_i32_19 = arith.constant 32 : i32
    %56 = tpu.dynamic_rotate %50 by %c32_i32_19 dim 1 : vector<8x128xf32>, i32 -> vector<8x128xf32>
    %57 = vector.extract_strided_slice %56 {offsets = [0, 0], sizes = [8, 32], strides = [1, 1]} : vector<8x128xf32> to vector<8x32xf32>
    %cst_20 = arith.constant 2.000000e+00 : f32
    %58 = vector.broadcast %cst_20 : f32 to vector<8x32xf32>
    %59 = arith.mulf %58, %55 : vector<8x32xf32>
    %cst_21 = arith.constant 1.000000e+00 : f32
    %60 = vector.broadcast %cst_21 : f32 to vector<8x32xf32>
    %61 = arith.subf %59, %60 : vector<8x32xf32>
    %62 = arith.mulf %53, %33 : vector<8x32xf32>
    %63 = arith.mulf %51, %61 : vector<8x32xf32>
    %64 = arith.addf %62, %63 : vector<8x32xf32>
    %65 = math.tanh %64 : vector<8x32xf32>
    %66 = arith.mulf %57, %65 : vector<8x32xf32>
    %c2 = arith.constant 2 : index
    %c0_22 = arith.constant 0 : index
    %c0_23 = arith.constant 0 : index
    %67 = vector.load %arg0[%c2, %c0_22, %c0_23] : memref<16x8x1xf32, #tpu.memory_space<vmem>>, vector<1x8x1xf32>
    %68 = vector.shape_cast %67 : vector<1x8x1xf32> to vector<8x1xf32>
    %69 = vector.broadcast %68 : vector<8x1xf32> to vector<8x128xf32>
    %70 = vector.broadcast %1 : vector<1x128xf32> to vector<8x128xf32>
    %71 = arith.mulf %69, %70 : vector<8x128xf32>
    %72 = vector.broadcast %2 : vector<1x128xf32> to vector<8x128xf32>
    %73 = arith.addf %71, %72 : vector<8x128xf32>
    %74 = arith.truncf %66 : vector<8x32xf32> to vector<8x32xbf16>
    %cst_24 = arith.constant dense<0.000000e+00> : vector<8x128xf32>
    %75 = tpu.matmul %74, %0, %cst_24 {dimension_numbers = #tpu.dot_dimension_numbers<[1], [0], [0], [1], [0, 0, 1, 1], [], []>} : vector<8x32xbf16>, vector<32x128xbf16>, vector<8x128xf32> -> vector<8x128xf32>
    %76 = arith.addf %73, %75 : vector<8x128xf32>
    %77 = arith.negf %76 : vector<8x128xf32>
    %78 = math.exp %77 : vector<8x128xf32>
    %cst_25 = arith.constant 1.000000e+00 : f32
    %79 = vector.broadcast %cst_25 : f32 to vector<8x128xf32>
    %80 = arith.addf %79, %78 : vector<8x128xf32>
    %81 = arith.divf %79, %80 : vector<8x128xf32>
    %82 = vector.extract_strided_slice %81 {offsets = [0, 0], sizes = [8, 32], strides = [1, 1]} : vector<8x128xf32> to vector<8x32xf32>
    %c96_i32_26 = arith.constant 96 : i32
    %83 = tpu.dynamic_rotate %81 by %c96_i32_26 dim 1 : vector<8x128xf32>, i32 -> vector<8x128xf32>
    %84 = vector.extract_strided_slice %83 {offsets = [0, 0], sizes = [8, 32], strides = [1, 1]} : vector<8x128xf32> to vector<8x32xf32>
    %c64_i32_27 = arith.constant 64 : i32
    %85 = tpu.dynamic_rotate %81 by %c64_i32_27 dim 1 : vector<8x128xf32>, i32 -> vector<8x128xf32>
    %86 = vector.extract_strided_slice %85 {offsets = [0, 0], sizes = [8, 32], strides = [1, 1]} : vector<8x128xf32> to vector<8x32xf32>
    %c32_i32_28 = arith.constant 32 : i32
    %87 = tpu.dynamic_rotate %81 by %c32_i32_28 dim 1 : vector<8x128xf32>, i32 -> vector<8x128xf32>
    %88 = vector.extract_strided_slice %87 {offsets = [0, 0], sizes = [8, 32], strides = [1, 1]} : vector<8x128xf32> to vector<8x32xf32>
    %cst_29 = arith.constant 2.000000e+00 : f32
    %89 = vector.broadcast %cst_29 : f32 to vector<8x32xf32>
    %90 = arith.mulf %89, %86 : vector<8x32xf32>
    %cst_30 = arith.constant 1.000000e+00 : f32
    %91 = vector.broadcast %cst_30 : f32 to vector<8x32xf32>
    %92 = arith.subf %90, %91 : vector<8x32xf32>
    %93 = arith.mulf %84, %64 : vector<8x32xf32>
    %94 = arith.mulf %82, %92 : vector<8x32xf32>
    %95 = arith.addf %93, %94 : vector<8x32xf32>
    %96 = math.tanh %95 : vector<8x32xf32>
    %97 = arith.mulf %88, %96 : vector<8x32xf32>
    %c3 = arith.constant 3 : index
    %c0_31 = arith.constant 0 : index
    %c0_32 = arith.constant 0 : index
    %98 = vector.load %arg0[%c3, %c0_31, %c0_32] : memref<16x8x1xf32, #tpu.memory_space<vmem>>, vector<1x8x1xf32>
    %99 = vector.shape_cast %98 : vector<1x8x1xf32> to vector<8x1xf32>
    %100 = vector.broadcast %99 : vector<8x1xf32> to vector<8x128xf32>
    %101 = vector.broadcast %1 : vector<1x128xf32> to vector<8x128xf32>
    %102 = arith.mulf %100, %101 : vector<8x128xf32>
    %103 = vector.broadcast %2 : vector<1x128xf32> to vector<8x128xf32>
    %104 = arith.addf %102, %103 : vector<8x128xf32>
    %105 = arith.truncf %97 : vector<8x32xf32> to vector<8x32xbf16>
    %cst_33 = arith.constant dense<0.000000e+00> : vector<8x128xf32>
    %106 = tpu.matmul %105, %0, %cst_33 {dimension_numbers = #tpu.dot_dimension_numbers<[1], [0], [0], [1], [0, 0, 1, 1], [], []>} : vector<8x32xbf16>, vector<32x128xbf16>, vector<8x128xf32> -> vector<8x128xf32>
    %107 = arith.addf %104, %106 : vector<8x128xf32>
    %108 = arith.negf %107 : vector<8x128xf32>
    %109 = math.exp %108 : vector<8x128xf32>
    %cst_34 = arith.constant 1.000000e+00 : f32
    %110 = vector.broadcast %cst_34 : f32 to vector<8x128xf32>
    %111 = arith.addf %110, %109 : vector<8x128xf32>
    %112 = arith.divf %110, %111 : vector<8x128xf32>
    %113 = vector.extract_strided_slice %112 {offsets = [0, 0], sizes = [8, 32], strides = [1, 1]} : vector<8x128xf32> to vector<8x32xf32>
    %c96_i32_35 = arith.constant 96 : i32
    %114 = tpu.dynamic_rotate %112 by %c96_i32_35 dim 1 : vector<8x128xf32>, i32 -> vector<8x128xf32>
    %115 = vector.extract_strided_slice %114 {offsets = [0, 0], sizes = [8, 32], strides = [1, 1]} : vector<8x128xf32> to vector<8x32xf32>
    %c64_i32_36 = arith.constant 64 : i32
    %116 = tpu.dynamic_rotate %112 by %c64_i32_36 dim 1 : vector<8x128xf32>, i32 -> vector<8x128xf32>
    %117 = vector.extract_strided_slice %116 {offsets = [0, 0], sizes = [8, 32], strides = [1, 1]} : vector<8x128xf32> to vector<8x32xf32>
    %c32_i32_37 = arith.constant 32 : i32
    %118 = tpu.dynamic_rotate %112 by %c32_i32_37 dim 1 : vector<8x128xf32>, i32 -> vector<8x128xf32>
    %119 = vector.extract_strided_slice %118 {offsets = [0, 0], sizes = [8, 32], strides = [1, 1]} : vector<8x128xf32> to vector<8x32xf32>
    %cst_38 = arith.constant 2.000000e+00 : f32
    %120 = vector.broadcast %cst_38 : f32 to vector<8x32xf32>
    %121 = arith.mulf %120, %117 : vector<8x32xf32>
    %cst_39 = arith.constant 1.000000e+00 : f32
    %122 = vector.broadcast %cst_39 : f32 to vector<8x32xf32>
    %123 = arith.subf %121, %122 : vector<8x32xf32>
    %124 = arith.mulf %115, %95 : vector<8x32xf32>
    %125 = arith.mulf %113, %123 : vector<8x32xf32>
    %126 = arith.addf %124, %125 : vector<8x32xf32>
    %127 = math.tanh %126 : vector<8x32xf32>
    %128 = arith.mulf %119, %127 : vector<8x32xf32>
    %c4 = arith.constant 4 : index
    %c0_40 = arith.constant 0 : index
    %c0_41 = arith.constant 0 : index
    %129 = vector.load %arg0[%c4, %c0_40, %c0_41] : memref<16x8x1xf32, #tpu.memory_space<vmem>>, vector<1x8x1xf32>
    %130 = vector.shape_cast %129 : vector<1x8x1xf32> to vector<8x1xf32>
    %131 = vector.broadcast %130 : vector<8x1xf32> to vector<8x128xf32>
    %132 = vector.broadcast %1 : vector<1x128xf32> to vector<8x128xf32>
    %133 = arith.mulf %131, %132 : vector<8x128xf32>
    %134 = vector.broadcast %2 : vector<1x128xf32> to vector<8x128xf32>
    %135 = arith.addf %133, %134 : vector<8x128xf32>
    %136 = arith.truncf %128 : vector<8x32xf32> to vector<8x32xbf16>
    %cst_42 = arith.constant dense<0.000000e+00> : vector<8x128xf32>
    %137 = tpu.matmul %136, %0, %cst_42 {dimension_numbers = #tpu.dot_dimension_numbers<[1], [0], [0], [1], [0, 0, 1, 1], [], []>} : vector<8x32xbf16>, vector<32x128xbf16>, vector<8x128xf32> -> vector<8x128xf32>
    %138 = arith.addf %135, %137 : vector<8x128xf32>
    %139 = arith.negf %138 : vector<8x128xf32>
    %140 = math.exp %139 : vector<8x128xf32>
    %cst_43 = arith.constant 1.000000e+00 : f32
    %141 = vector.broadcast %cst_43 : f32 to vector<8x128xf32>
    %142 = arith.addf %141, %140 : vector<8x128xf32>
    %143 = arith.divf %141, %142 : vector<8x128xf32>
    %144 = vector.extract_strided_slice %143 {offsets = [0, 0], sizes = [8, 32], strides = [1, 1]} : vector<8x128xf32> to vector<8x32xf32>
    %c96_i32_44 = arith.constant 96 : i32
    %145 = tpu.dynamic_rotate %143 by %c96_i32_44 dim 1 : vector<8x128xf32>, i32 -> vector<8x128xf32>
    %146 = vector.extract_strided_slice %145 {offsets = [0, 0], sizes = [8, 32], strides = [1, 1]} : vector<8x128xf32> to vector<8x32xf32>
    %c64_i32_45 = arith.constant 64 : i32
    %147 = tpu.dynamic_rotate %143 by %c64_i32_45 dim 1 : vector<8x128xf32>, i32 -> vector<8x128xf32>
    %148 = vector.extract_strided_slice %147 {offsets = [0, 0], sizes = [8, 32], strides = [1, 1]} : vector<8x128xf32> to vector<8x32xf32>
    %c32_i32_46 = arith.constant 32 : i32
    %149 = tpu.dynamic_rotate %143 by %c32_i32_46 dim 1 : vector<8x128xf32>, i32 -> vector<8x128xf32>
    %150 = vector.extract_strided_slice %149 {offsets = [0, 0], sizes = [8, 32], strides = [1, 1]} : vector<8x128xf32> to vector<8x32xf32>
    %cst_47 = arith.constant 2.000000e+00 : f32
    %151 = vector.broadcast %cst_47 : f32 to vector<8x32xf32>
    %152 = arith.mulf %151, %148 : vector<8x32xf32>
    %cst_48 = arith.constant 1.000000e+00 : f32
    %153 = vector.broadcast %cst_48 : f32 to vector<8x32xf32>
    %154 = arith.subf %152, %153 : vector<8x32xf32>
    %155 = arith.mulf %146, %126 : vector<8x32xf32>
    %156 = arith.mulf %144, %154 : vector<8x32xf32>
    %157 = arith.addf %155, %156 : vector<8x32xf32>
    %158 = math.tanh %157 : vector<8x32xf32>
    %159 = arith.mulf %150, %158 : vector<8x32xf32>
    %c5 = arith.constant 5 : index
    %c0_49 = arith.constant 0 : index
    %c0_50 = arith.constant 0 : index
    %160 = vector.load %arg0[%c5, %c0_49, %c0_50] : memref<16x8x1xf32, #tpu.memory_space<vmem>>, vector<1x8x1xf32>
    %161 = vector.shape_cast %160 : vector<1x8x1xf32> to vector<8x1xf32>
    %162 = vector.broadcast %161 : vector<8x1xf32> to vector<8x128xf32>
    %163 = vector.broadcast %1 : vector<1x128xf32> to vector<8x128xf32>
    %164 = arith.mulf %162, %163 : vector<8x128xf32>
    %165 = vector.broadcast %2 : vector<1x128xf32> to vector<8x128xf32>
    %166 = arith.addf %164, %165 : vector<8x128xf32>
    %167 = arith.truncf %159 : vector<8x32xf32> to vector<8x32xbf16>
    %cst_51 = arith.constant dense<0.000000e+00> : vector<8x128xf32>
    %168 = tpu.matmul %167, %0, %cst_51 {dimension_numbers = #tpu.dot_dimension_numbers<[1], [0], [0], [1], [0, 0, 1, 1], [], []>} : vector<8x32xbf16>, vector<32x128xbf16>, vector<8x128xf32> -> vector<8x128xf32>
    %169 = arith.addf %166, %168 : vector<8x128xf32>
    %170 = arith.negf %169 : vector<8x128xf32>
    %171 = math.exp %170 : vector<8x128xf32>
    %cst_52 = arith.constant 1.000000e+00 : f32
    %172 = vector.broadcast %cst_52 : f32 to vector<8x128xf32>
    %173 = arith.addf %172, %171 : vector<8x128xf32>
    %174 = arith.divf %172, %173 : vector<8x128xf32>
    %175 = vector.extract_strided_slice %174 {offsets = [0, 0], sizes = [8, 32], strides = [1, 1]} : vector<8x128xf32> to vector<8x32xf32>
    %c96_i32_53 = arith.constant 96 : i32
    %176 = tpu.dynamic_rotate %174 by %c96_i32_53 dim 1 : vector<8x128xf32>, i32 -> vector<8x128xf32>
    %177 = vector.extract_strided_slice %176 {offsets = [0, 0], sizes = [8, 32], strides = [1, 1]} : vector<8x128xf32> to vector<8x32xf32>
    %c64_i32_54 = arith.constant 64 : i32
    %178 = tpu.dynamic_rotate %174 by %c64_i32_54 dim 1 : vector<8x128xf32>, i32 -> vector<8x128xf32>
    %179 = vector.extract_strided_slice %178 {offsets = [0, 0], sizes = [8, 32], strides = [1, 1]} : vector<8x128xf32> to vector<8x32xf32>
    %c32_i32_55 = arith.constant 32 : i32
    %180 = tpu.dynamic_rotate %174 by %c32_i32_55 dim 1 : vector<8x128xf32>, i32 -> vector<8x128xf32>
    %181 = vector.extract_strided_slice %180 {offsets = [0, 0], sizes = [8, 32], strides = [1, 1]} : vector<8x128xf32> to vector<8x32xf32>
    %cst_56 = arith.constant 2.000000e+00 : f32
    %182 = vector.broadcast %cst_56 : f32 to vector<8x32xf32>
    %183 = arith.mulf %182, %179 : vector<8x32xf32>
    %cst_57 = arith.constant 1.000000e+00 : f32
    %184 = vector.broadcast %cst_57 : f32 to vector<8x32xf32>
    %185 = arith.subf %183, %184 : vector<8x32xf32>
    %186 = arith.mulf %177, %157 : vector<8x32xf32>
    %187 = arith.mulf %175, %185 : vector<8x32xf32>
    %188 = arith.addf %186, %187 : vector<8x32xf32>
    %189 = math.tanh %188 : vector<8x32xf32>
    %190 = arith.mulf %181, %189 : vector<8x32xf32>
    %c6 = arith.constant 6 : index
    %c0_58 = arith.constant 0 : index
    %c0_59 = arith.constant 0 : index
    %191 = vector.load %arg0[%c6, %c0_58, %c0_59] : memref<16x8x1xf32, #tpu.memory_space<vmem>>, vector<1x8x1xf32>
    %192 = vector.shape_cast %191 : vector<1x8x1xf32> to vector<8x1xf32>
    %193 = vector.broadcast %192 : vector<8x1xf32> to vector<8x128xf32>
    %194 = vector.broadcast %1 : vector<1x128xf32> to vector<8x128xf32>
    %195 = arith.mulf %193, %194 : vector<8x128xf32>
    %196 = vector.broadcast %2 : vector<1x128xf32> to vector<8x128xf32>
    %197 = arith.addf %195, %196 : vector<8x128xf32>
    %198 = arith.truncf %190 : vector<8x32xf32> to vector<8x32xbf16>
    %cst_60 = arith.constant dense<0.000000e+00> : vector<8x128xf32>
    %199 = tpu.matmul %198, %0, %cst_60 {dimension_numbers = #tpu.dot_dimension_numbers<[1], [0], [0], [1], [0, 0, 1, 1], [], []>} : vector<8x32xbf16>, vector<32x128xbf16>, vector<8x128xf32> -> vector<8x128xf32>
    %200 = arith.addf %197, %199 : vector<8x128xf32>
    %201 = arith.negf %200 : vector<8x128xf32>
    %202 = math.exp %201 : vector<8x128xf32>
    %cst_61 = arith.constant 1.000000e+00 : f32
    %203 = vector.broadcast %cst_61 : f32 to vector<8x128xf32>
    %204 = arith.addf %203, %202 : vector<8x128xf32>
    %205 = arith.divf %203, %204 : vector<8x128xf32>
    %206 = vector.extract_strided_slice %205 {offsets = [0, 0], sizes = [8, 32], strides = [1, 1]} : vector<8x128xf32> to vector<8x32xf32>
    %c96_i32_62 = arith.constant 96 : i32
    %207 = tpu.dynamic_rotate %205 by %c96_i32_62 dim 1 : vector<8x128xf32>, i32 -> vector<8x128xf32>
    %208 = vector.extract_strided_slice %207 {offsets = [0, 0], sizes = [8, 32], strides = [1, 1]} : vector<8x128xf32> to vector<8x32xf32>
    %c64_i32_63 = arith.constant 64 : i32
    %209 = tpu.dynamic_rotate %205 by %c64_i32_63 dim 1 : vector<8x128xf32>, i32 -> vector<8x128xf32>
    %210 = vector.extract_strided_slice %209 {offsets = [0, 0], sizes = [8, 32], strides = [1, 1]} : vector<8x128xf32> to vector<8x32xf32>
    %c32_i32_64 = arith.constant 32 : i32
    %211 = tpu.dynamic_rotate %205 by %c32_i32_64 dim 1 : vector<8x128xf32>, i32 -> vector<8x128xf32>
    %212 = vector.extract_strided_slice %211 {offsets = [0, 0], sizes = [8, 32], strides = [1, 1]} : vector<8x128xf32> to vector<8x32xf32>
    %cst_65 = arith.constant 2.000000e+00 : f32
    %213 = vector.broadcast %cst_65 : f32 to vector<8x32xf32>
    %214 = arith.mulf %213, %210 : vector<8x32xf32>
    %cst_66 = arith.constant 1.000000e+00 : f32
    %215 = vector.broadcast %cst_66 : f32 to vector<8x32xf32>
    %216 = arith.subf %214, %215 : vector<8x32xf32>
    %217 = arith.mulf %208, %188 : vector<8x32xf32>
    %218 = arith.mulf %206, %216 : vector<8x32xf32>
    %219 = arith.addf %217, %218 : vector<8x32xf32>
    %220 = math.tanh %219 : vector<8x32xf32>
    %221 = arith.mulf %212, %220 : vector<8x32xf32>
    %c7 = arith.constant 7 : index
    %c0_67 = arith.constant 0 : index
    %c0_68 = arith.constant 0 : index
    %222 = vector.load %arg0[%c7, %c0_67, %c0_68] : memref<16x8x1xf32, #tpu.memory_space<vmem>>, vector<1x8x1xf32>
    %223 = vector.shape_cast %222 : vector<1x8x1xf32> to vector<8x1xf32>
    %224 = vector.broadcast %223 : vector<8x1xf32> to vector<8x128xf32>
    %225 = vector.broadcast %1 : vector<1x128xf32> to vector<8x128xf32>
    %226 = arith.mulf %224, %225 : vector<8x128xf32>
    %227 = vector.broadcast %2 : vector<1x128xf32> to vector<8x128xf32>
    %228 = arith.addf %226, %227 : vector<8x128xf32>
    %229 = arith.truncf %221 : vector<8x32xf32> to vector<8x32xbf16>
    %cst_69 = arith.constant dense<0.000000e+00> : vector<8x128xf32>
    %230 = tpu.matmul %229, %0, %cst_69 {dimension_numbers = #tpu.dot_dimension_numbers<[1], [0], [0], [1], [0, 0, 1, 1], [], []>} : vector<8x32xbf16>, vector<32x128xbf16>, vector<8x128xf32> -> vector<8x128xf32>
    %231 = arith.addf %228, %230 : vector<8x128xf32>
    %232 = arith.negf %231 : vector<8x128xf32>
    %233 = math.exp %232 : vector<8x128xf32>
    %cst_70 = arith.constant 1.000000e+00 : f32
    %234 = vector.broadcast %cst_70 : f32 to vector<8x128xf32>
    %235 = arith.addf %234, %233 : vector<8x128xf32>
    %236 = arith.divf %234, %235 : vector<8x128xf32>
    %237 = vector.extract_strided_slice %236 {offsets = [0, 0], sizes = [8, 32], strides = [1, 1]} : vector<8x128xf32> to vector<8x32xf32>
    %c96_i32_71 = arith.constant 96 : i32
    %238 = tpu.dynamic_rotate %236 by %c96_i32_71 dim 1 : vector<8x128xf32>, i32 -> vector<8x128xf32>
    %239 = vector.extract_strided_slice %238 {offsets = [0, 0], sizes = [8, 32], strides = [1, 1]} : vector<8x128xf32> to vector<8x32xf32>
    %c64_i32_72 = arith.constant 64 : i32
    %240 = tpu.dynamic_rotate %236 by %c64_i32_72 dim 1 : vector<8x128xf32>, i32 -> vector<8x128xf32>
    %241 = vector.extract_strided_slice %240 {offsets = [0, 0], sizes = [8, 32], strides = [1, 1]} : vector<8x128xf32> to vector<8x32xf32>
    %c32_i32_73 = arith.constant 32 : i32
    %242 = tpu.dynamic_rotate %236 by %c32_i32_73 dim 1 : vector<8x128xf32>, i32 -> vector<8x128xf32>
    %243 = vector.extract_strided_slice %242 {offsets = [0, 0], sizes = [8, 32], strides = [1, 1]} : vector<8x128xf32> to vector<8x32xf32>
    %cst_74 = arith.constant 2.000000e+00 : f32
    %244 = vector.broadcast %cst_74 : f32 to vector<8x32xf32>
    %245 = arith.mulf %244, %241 : vector<8x32xf32>
    %cst_75 = arith.constant 1.000000e+00 : f32
    %246 = vector.broadcast %cst_75 : f32 to vector<8x32xf32>
    %247 = arith.subf %245, %246 : vector<8x32xf32>
    %248 = arith.mulf %239, %219 : vector<8x32xf32>
    %249 = arith.mulf %237, %247 : vector<8x32xf32>
    %250 = arith.addf %248, %249 : vector<8x32xf32>
    %251 = math.tanh %250 : vector<8x32xf32>
    %252 = arith.mulf %243, %251 : vector<8x32xf32>
    %c8 = arith.constant 8 : index
    %c0_76 = arith.constant 0 : index
    %c0_77 = arith.constant 0 : index
    %253 = vector.load %arg0[%c8, %c0_76, %c0_77] : memref<16x8x1xf32, #tpu.memory_space<vmem>>, vector<1x8x1xf32>
    %254 = vector.shape_cast %253 : vector<1x8x1xf32> to vector<8x1xf32>
    %255 = vector.broadcast %254 : vector<8x1xf32> to vector<8x128xf32>
    %256 = vector.broadcast %1 : vector<1x128xf32> to vector<8x128xf32>
    %257 = arith.mulf %255, %256 : vector<8x128xf32>
    %258 = vector.broadcast %2 : vector<1x128xf32> to vector<8x128xf32>
    %259 = arith.addf %257, %258 : vector<8x128xf32>
    %260 = arith.truncf %252 : vector<8x32xf32> to vector<8x32xbf16>
    %cst_78 = arith.constant dense<0.000000e+00> : vector<8x128xf32>
    %261 = tpu.matmul %260, %0, %cst_78 {dimension_numbers = #tpu.dot_dimension_numbers<[1], [0], [0], [1], [0, 0, 1, 1], [], []>} : vector<8x32xbf16>, vector<32x128xbf16>, vector<8x128xf32> -> vector<8x128xf32>
    %262 = arith.addf %259, %261 : vector<8x128xf32>
    %263 = arith.negf %262 : vector<8x128xf32>
    %264 = math.exp %263 : vector<8x128xf32>
    %cst_79 = arith.constant 1.000000e+00 : f32
    %265 = vector.broadcast %cst_79 : f32 to vector<8x128xf32>
    %266 = arith.addf %265, %264 : vector<8x128xf32>
    %267 = arith.divf %265, %266 : vector<8x128xf32>
    %268 = vector.extract_strided_slice %267 {offsets = [0, 0], sizes = [8, 32], strides = [1, 1]} : vector<8x128xf32> to vector<8x32xf32>
    %c96_i32_80 = arith.constant 96 : i32
    %269 = tpu.dynamic_rotate %267 by %c96_i32_80 dim 1 : vector<8x128xf32>, i32 -> vector<8x128xf32>
    %270 = vector.extract_strided_slice %269 {offsets = [0, 0], sizes = [8, 32], strides = [1, 1]} : vector<8x128xf32> to vector<8x32xf32>
    %c64_i32_81 = arith.constant 64 : i32
    %271 = tpu.dynamic_rotate %267 by %c64_i32_81 dim 1 : vector<8x128xf32>, i32 -> vector<8x128xf32>
    %272 = vector.extract_strided_slice %271 {offsets = [0, 0], sizes = [8, 32], strides = [1, 1]} : vector<8x128xf32> to vector<8x32xf32>
    %c32_i32_82 = arith.constant 32 : i32
    %273 = tpu.dynamic_rotate %267 by %c32_i32_82 dim 1 : vector<8x128xf32>, i32 -> vector<8x128xf32>
    %274 = vector.extract_strided_slice %273 {offsets = [0, 0], sizes = [8, 32], strides = [1, 1]} : vector<8x128xf32> to vector<8x32xf32>
    %cst_83 = arith.constant 2.000000e+00 : f32
    %275 = vector.broadcast %cst_83 : f32 to vector<8x32xf32>
    %276 = arith.mulf %275, %272 : vector<8x32xf32>
    %cst_84 = arith.constant 1.000000e+00 : f32
    %277 = vector.broadcast %cst_84 : f32 to vector<8x32xf32>
    %278 = arith.subf %276, %277 : vector<8x32xf32>
    %279 = arith.mulf %270, %250 : vector<8x32xf32>
    %280 = arith.mulf %268, %278 : vector<8x32xf32>
    %281 = arith.addf %279, %280 : vector<8x32xf32>
    %282 = math.tanh %281 : vector<8x32xf32>
    %283 = arith.mulf %274, %282 : vector<8x32xf32>
    %c9 = arith.constant 9 : index
    %c0_85 = arith.constant 0 : index
    %c0_86 = arith.constant 0 : index
    %284 = vector.load %arg0[%c9, %c0_85, %c0_86] : memref<16x8x1xf32, #tpu.memory_space<vmem>>, vector<1x8x1xf32>
    %285 = vector.shape_cast %284 : vector<1x8x1xf32> to vector<8x1xf32>
    %286 = vector.broadcast %285 : vector<8x1xf32> to vector<8x128xf32>
    %287 = vector.broadcast %1 : vector<1x128xf32> to vector<8x128xf32>
    %288 = arith.mulf %286, %287 : vector<8x128xf32>
    %289 = vector.broadcast %2 : vector<1x128xf32> to vector<8x128xf32>
    %290 = arith.addf %288, %289 : vector<8x128xf32>
    %291 = arith.truncf %283 : vector<8x32xf32> to vector<8x32xbf16>
    %cst_87 = arith.constant dense<0.000000e+00> : vector<8x128xf32>
    %292 = tpu.matmul %291, %0, %cst_87 {dimension_numbers = #tpu.dot_dimension_numbers<[1], [0], [0], [1], [0, 0, 1, 1], [], []>} : vector<8x32xbf16>, vector<32x128xbf16>, vector<8x128xf32> -> vector<8x128xf32>
    %293 = arith.addf %290, %292 : vector<8x128xf32>
    %294 = arith.negf %293 : vector<8x128xf32>
    %295 = math.exp %294 : vector<8x128xf32>
    %cst_88 = arith.constant 1.000000e+00 : f32
    %296 = vector.broadcast %cst_88 : f32 to vector<8x128xf32>
    %297 = arith.addf %296, %295 : vector<8x128xf32>
    %298 = arith.divf %296, %297 : vector<8x128xf32>
    %299 = vector.extract_strided_slice %298 {offsets = [0, 0], sizes = [8, 32], strides = [1, 1]} : vector<8x128xf32> to vector<8x32xf32>
    %c96_i32_89 = arith.constant 96 : i32
    %300 = tpu.dynamic_rotate %298 by %c96_i32_89 dim 1 : vector<8x128xf32>, i32 -> vector<8x128xf32>
    %301 = vector.extract_strided_slice %300 {offsets = [0, 0], sizes = [8, 32], strides = [1, 1]} : vector<8x128xf32> to vector<8x32xf32>
    %c64_i32_90 = arith.constant 64 : i32
    %302 = tpu.dynamic_rotate %298 by %c64_i32_90 dim 1 : vector<8x128xf32>, i32 -> vector<8x128xf32>
    %303 = vector.extract_strided_slice %302 {offsets = [0, 0], sizes = [8, 32], strides = [1, 1]} : vector<8x128xf32> to vector<8x32xf32>
    %c32_i32_91 = arith.constant 32 : i32
    %304 = tpu.dynamic_rotate %298 by %c32_i32_91 dim 1 : vector<8x128xf32>, i32 -> vector<8x128xf32>
    %305 = vector.extract_strided_slice %304 {offsets = [0, 0], sizes = [8, 32], strides = [1, 1]} : vector<8x128xf32> to vector<8x32xf32>
    %cst_92 = arith.constant 2.000000e+00 : f32
    %306 = vector.broadcast %cst_92 : f32 to vector<8x32xf32>
    %307 = arith.mulf %306, %303 : vector<8x32xf32>
    %cst_93 = arith.constant 1.000000e+00 : f32
    %308 = vector.broadcast %cst_93 : f32 to vector<8x32xf32>
    %309 = arith.subf %307, %308 : vector<8x32xf32>
    %310 = arith.mulf %301, %281 : vector<8x32xf32>
    %311 = arith.mulf %299, %309 : vector<8x32xf32>
    %312 = arith.addf %310, %311 : vector<8x32xf32>
    %313 = math.tanh %312 : vector<8x32xf32>
    %314 = arith.mulf %305, %313 : vector<8x32xf32>
    %c10 = arith.constant 10 : index
    %c0_94 = arith.constant 0 : index
    %c0_95 = arith.constant 0 : index
    %315 = vector.load %arg0[%c10, %c0_94, %c0_95] : memref<16x8x1xf32, #tpu.memory_space<vmem>>, vector<1x8x1xf32>
    %316 = vector.shape_cast %315 : vector<1x8x1xf32> to vector<8x1xf32>
    %317 = vector.broadcast %316 : vector<8x1xf32> to vector<8x128xf32>
    %318 = vector.broadcast %1 : vector<1x128xf32> to vector<8x128xf32>
    %319 = arith.mulf %317, %318 : vector<8x128xf32>
    %320 = vector.broadcast %2 : vector<1x128xf32> to vector<8x128xf32>
    %321 = arith.addf %319, %320 : vector<8x128xf32>
    %322 = arith.truncf %314 : vector<8x32xf32> to vector<8x32xbf16>
    %cst_96 = arith.constant dense<0.000000e+00> : vector<8x128xf32>
    %323 = tpu.matmul %322, %0, %cst_96 {dimension_numbers = #tpu.dot_dimension_numbers<[1], [0], [0], [1], [0, 0, 1, 1], [], []>} : vector<8x32xbf16>, vector<32x128xbf16>, vector<8x128xf32> -> vector<8x128xf32>
    %324 = arith.addf %321, %323 : vector<8x128xf32>
    %325 = arith.negf %324 : vector<8x128xf32>
    %326 = math.exp %325 : vector<8x128xf32>
    %cst_97 = arith.constant 1.000000e+00 : f32
    %327 = vector.broadcast %cst_97 : f32 to vector<8x128xf32>
    %328 = arith.addf %327, %326 : vector<8x128xf32>
    %329 = arith.divf %327, %328 : vector<8x128xf32>
    %330 = vector.extract_strided_slice %329 {offsets = [0, 0], sizes = [8, 32], strides = [1, 1]} : vector<8x128xf32> to vector<8x32xf32>
    %c96_i32_98 = arith.constant 96 : i32
    %331 = tpu.dynamic_rotate %329 by %c96_i32_98 dim 1 : vector<8x128xf32>, i32 -> vector<8x128xf32>
    %332 = vector.extract_strided_slice %331 {offsets = [0, 0], sizes = [8, 32], strides = [1, 1]} : vector<8x128xf32> to vector<8x32xf32>
    %c64_i32_99 = arith.constant 64 : i32
    %333 = tpu.dynamic_rotate %329 by %c64_i32_99 dim 1 : vector<8x128xf32>, i32 -> vector<8x128xf32>
    %334 = vector.extract_strided_slice %333 {offsets = [0, 0], sizes = [8, 32], strides = [1, 1]} : vector<8x128xf32> to vector<8x32xf32>
    %c32_i32_100 = arith.constant 32 : i32
    %335 = tpu.dynamic_rotate %329 by %c32_i32_100 dim 1 : vector<8x128xf32>, i32 -> vector<8x128xf32>
    %336 = vector.extract_strided_slice %335 {offsets = [0, 0], sizes = [8, 32], strides = [1, 1]} : vector<8x128xf32> to vector<8x32xf32>
    %cst_101 = arith.constant 2.000000e+00 : f32
    %337 = vector.broadcast %cst_101 : f32 to vector<8x32xf32>
    %338 = arith.mulf %337, %334 : vector<8x32xf32>
    %cst_102 = arith.constant 1.000000e+00 : f32
    %339 = vector.broadcast %cst_102 : f32 to vector<8x32xf32>
    %340 = arith.subf %338, %339 : vector<8x32xf32>
    %341 = arith.mulf %332, %312 : vector<8x32xf32>
    %342 = arith.mulf %330, %340 : vector<8x32xf32>
    %343 = arith.addf %341, %342 : vector<8x32xf32>
    %344 = math.tanh %343 : vector<8x32xf32>
    %345 = arith.mulf %336, %344 : vector<8x32xf32>
    %c11 = arith.constant 11 : index
    %c0_103 = arith.constant 0 : index
    %c0_104 = arith.constant 0 : index
    %346 = vector.load %arg0[%c11, %c0_103, %c0_104] : memref<16x8x1xf32, #tpu.memory_space<vmem>>, vector<1x8x1xf32>
    %347 = vector.shape_cast %346 : vector<1x8x1xf32> to vector<8x1xf32>
    %348 = vector.broadcast %347 : vector<8x1xf32> to vector<8x128xf32>
    %349 = vector.broadcast %1 : vector<1x128xf32> to vector<8x128xf32>
    %350 = arith.mulf %348, %349 : vector<8x128xf32>
    %351 = vector.broadcast %2 : vector<1x128xf32> to vector<8x128xf32>
    %352 = arith.addf %350, %351 : vector<8x128xf32>
    %353 = arith.truncf %345 : vector<8x32xf32> to vector<8x32xbf16>
    %cst_105 = arith.constant dense<0.000000e+00> : vector<8x128xf32>
    %354 = tpu.matmul %353, %0, %cst_105 {dimension_numbers = #tpu.dot_dimension_numbers<[1], [0], [0], [1], [0, 0, 1, 1], [], []>} : vector<8x32xbf16>, vector<32x128xbf16>, vector<8x128xf32> -> vector<8x128xf32>
    %355 = arith.addf %352, %354 : vector<8x128xf32>
    %356 = arith.negf %355 : vector<8x128xf32>
    %357 = math.exp %356 : vector<8x128xf32>
    %cst_106 = arith.constant 1.000000e+00 : f32
    %358 = vector.broadcast %cst_106 : f32 to vector<8x128xf32>
    %359 = arith.addf %358, %357 : vector<8x128xf32>
    %360 = arith.divf %358, %359 : vector<8x128xf32>
    %361 = vector.extract_strided_slice %360 {offsets = [0, 0], sizes = [8, 32], strides = [1, 1]} : vector<8x128xf32> to vector<8x32xf32>
    %c96_i32_107 = arith.constant 96 : i32
    %362 = tpu.dynamic_rotate %360 by %c96_i32_107 dim 1 : vector<8x128xf32>, i32 -> vector<8x128xf32>
    %363 = vector.extract_strided_slice %362 {offsets = [0, 0], sizes = [8, 32], strides = [1, 1]} : vector<8x128xf32> to vector<8x32xf32>
    %c64_i32_108 = arith.constant 64 : i32
    %364 = tpu.dynamic_rotate %360 by %c64_i32_108 dim 1 : vector<8x128xf32>, i32 -> vector<8x128xf32>
    %365 = vector.extract_strided_slice %364 {offsets = [0, 0], sizes = [8, 32], strides = [1, 1]} : vector<8x128xf32> to vector<8x32xf32>
    %c32_i32_109 = arith.constant 32 : i32
    %366 = tpu.dynamic_rotate %360 by %c32_i32_109 dim 1 : vector<8x128xf32>, i32 -> vector<8x128xf32>
    %367 = vector.extract_strided_slice %366 {offsets = [0, 0], sizes = [8, 32], strides = [1, 1]} : vector<8x128xf32> to vector<8x32xf32>
    %cst_110 = arith.constant 2.000000e+00 : f32
    %368 = vector.broadcast %cst_110 : f32 to vector<8x32xf32>
    %369 = arith.mulf %368, %365 : vector<8x32xf32>
    %cst_111 = arith.constant 1.000000e+00 : f32
    %370 = vector.broadcast %cst_111 : f32 to vector<8x32xf32>
    %371 = arith.subf %369, %370 : vector<8x32xf32>
    %372 = arith.mulf %363, %343 : vector<8x32xf32>
    %373 = arith.mulf %361, %371 : vector<8x32xf32>
    %374 = arith.addf %372, %373 : vector<8x32xf32>
    %375 = math.tanh %374 : vector<8x32xf32>
    %376 = arith.mulf %367, %375 : vector<8x32xf32>
    %c12 = arith.constant 12 : index
    %c0_112 = arith.constant 0 : index
    %c0_113 = arith.constant 0 : index
    %377 = vector.load %arg0[%c12, %c0_112, %c0_113] : memref<16x8x1xf32, #tpu.memory_space<vmem>>, vector<1x8x1xf32>
    %378 = vector.shape_cast %377 : vector<1x8x1xf32> to vector<8x1xf32>
    %379 = vector.broadcast %378 : vector<8x1xf32> to vector<8x128xf32>
    %380 = vector.broadcast %1 : vector<1x128xf32> to vector<8x128xf32>
    %381 = arith.mulf %379, %380 : vector<8x128xf32>
    %382 = vector.broadcast %2 : vector<1x128xf32> to vector<8x128xf32>
    %383 = arith.addf %381, %382 : vector<8x128xf32>
    %384 = arith.truncf %376 : vector<8x32xf32> to vector<8x32xbf16>
    %cst_114 = arith.constant dense<0.000000e+00> : vector<8x128xf32>
    %385 = tpu.matmul %384, %0, %cst_114 {dimension_numbers = #tpu.dot_dimension_numbers<[1], [0], [0], [1], [0, 0, 1, 1], [], []>} : vector<8x32xbf16>, vector<32x128xbf16>, vector<8x128xf32> -> vector<8x128xf32>
    %386 = arith.addf %383, %385 : vector<8x128xf32>
    %387 = arith.negf %386 : vector<8x128xf32>
    %388 = math.exp %387 : vector<8x128xf32>
    %cst_115 = arith.constant 1.000000e+00 : f32
    %389 = vector.broadcast %cst_115 : f32 to vector<8x128xf32>
    %390 = arith.addf %389, %388 : vector<8x128xf32>
    %391 = arith.divf %389, %390 : vector<8x128xf32>
    %392 = vector.extract_strided_slice %391 {offsets = [0, 0], sizes = [8, 32], strides = [1, 1]} : vector<8x128xf32> to vector<8x32xf32>
    %c96_i32_116 = arith.constant 96 : i32
    %393 = tpu.dynamic_rotate %391 by %c96_i32_116 dim 1 : vector<8x128xf32>, i32 -> vector<8x128xf32>
    %394 = vector.extract_strided_slice %393 {offsets = [0, 0], sizes = [8, 32], strides = [1, 1]} : vector<8x128xf32> to vector<8x32xf32>
    %c64_i32_117 = arith.constant 64 : i32
    %395 = tpu.dynamic_rotate %391 by %c64_i32_117 dim 1 : vector<8x128xf32>, i32 -> vector<8x128xf32>
    %396 = vector.extract_strided_slice %395 {offsets = [0, 0], sizes = [8, 32], strides = [1, 1]} : vector<8x128xf32> to vector<8x32xf32>
    %c32_i32_118 = arith.constant 32 : i32
    %397 = tpu.dynamic_rotate %391 by %c32_i32_118 dim 1 : vector<8x128xf32>, i32 -> vector<8x128xf32>
    %398 = vector.extract_strided_slice %397 {offsets = [0, 0], sizes = [8, 32], strides = [1, 1]} : vector<8x128xf32> to vector<8x32xf32>
    %cst_119 = arith.constant 2.000000e+00 : f32
    %399 = vector.broadcast %cst_119 : f32 to vector<8x32xf32>
    %400 = arith.mulf %399, %396 : vector<8x32xf32>
    %cst_120 = arith.constant 1.000000e+00 : f32
    %401 = vector.broadcast %cst_120 : f32 to vector<8x32xf32>
    %402 = arith.subf %400, %401 : vector<8x32xf32>
    %403 = arith.mulf %394, %374 : vector<8x32xf32>
    %404 = arith.mulf %392, %402 : vector<8x32xf32>
    %405 = arith.addf %403, %404 : vector<8x32xf32>
    %406 = math.tanh %405 : vector<8x32xf32>
    %407 = arith.mulf %398, %406 : vector<8x32xf32>
    %c13 = arith.constant 13 : index
    %c0_121 = arith.constant 0 : index
    %c0_122 = arith.constant 0 : index
    %408 = vector.load %arg0[%c13, %c0_121, %c0_122] : memref<16x8x1xf32, #tpu.memory_space<vmem>>, vector<1x8x1xf32>
    %409 = vector.shape_cast %408 : vector<1x8x1xf32> to vector<8x1xf32>
    %410 = vector.broadcast %409 : vector<8x1xf32> to vector<8x128xf32>
    %411 = vector.broadcast %1 : vector<1x128xf32> to vector<8x128xf32>
    %412 = arith.mulf %410, %411 : vector<8x128xf32>
    %413 = vector.broadcast %2 : vector<1x128xf32> to vector<8x128xf32>
    %414 = arith.addf %412, %413 : vector<8x128xf32>
    %415 = arith.truncf %407 : vector<8x32xf32> to vector<8x32xbf16>
    %cst_123 = arith.constant dense<0.000000e+00> : vector<8x128xf32>
    %416 = tpu.matmul %415, %0, %cst_123 {dimension_numbers = #tpu.dot_dimension_numbers<[1], [0], [0], [1], [0, 0, 1, 1], [], []>} : vector<8x32xbf16>, vector<32x128xbf16>, vector<8x128xf32> -> vector<8x128xf32>
    %417 = arith.addf %414, %416 : vector<8x128xf32>
    %418 = arith.negf %417 : vector<8x128xf32>
    %419 = math.exp %418 : vector<8x128xf32>
    %cst_124 = arith.constant 1.000000e+00 : f32
    %420 = vector.broadcast %cst_124 : f32 to vector<8x128xf32>
    %421 = arith.addf %420, %419 : vector<8x128xf32>
    %422 = arith.divf %420, %421 : vector<8x128xf32>
    %423 = vector.extract_strided_slice %422 {offsets = [0, 0], sizes = [8, 32], strides = [1, 1]} : vector<8x128xf32> to vector<8x32xf32>
    %c96_i32_125 = arith.constant 96 : i32
    %424 = tpu.dynamic_rotate %422 by %c96_i32_125 dim 1 : vector<8x128xf32>, i32 -> vector<8x128xf32>
    %425 = vector.extract_strided_slice %424 {offsets = [0, 0], sizes = [8, 32], strides = [1, 1]} : vector<8x128xf32> to vector<8x32xf32>
    %c64_i32_126 = arith.constant 64 : i32
    %426 = tpu.dynamic_rotate %422 by %c64_i32_126 dim 1 : vector<8x128xf32>, i32 -> vector<8x128xf32>
    %427 = vector.extract_strided_slice %426 {offsets = [0, 0], sizes = [8, 32], strides = [1, 1]} : vector<8x128xf32> to vector<8x32xf32>
    %c32_i32_127 = arith.constant 32 : i32
    %428 = tpu.dynamic_rotate %422 by %c32_i32_127 dim 1 : vector<8x128xf32>, i32 -> vector<8x128xf32>
    %429 = vector.extract_strided_slice %428 {offsets = [0, 0], sizes = [8, 32], strides = [1, 1]} : vector<8x128xf32> to vector<8x32xf32>
    %cst_128 = arith.constant 2.000000e+00 : f32
    %430 = vector.broadcast %cst_128 : f32 to vector<8x32xf32>
    %431 = arith.mulf %430, %427 : vector<8x32xf32>
    %cst_129 = arith.constant 1.000000e+00 : f32
    %432 = vector.broadcast %cst_129 : f32 to vector<8x32xf32>
    %433 = arith.subf %431, %432 : vector<8x32xf32>
    %434 = arith.mulf %425, %405 : vector<8x32xf32>
    %435 = arith.mulf %423, %433 : vector<8x32xf32>
    %436 = arith.addf %434, %435 : vector<8x32xf32>
    %437 = math.tanh %436 : vector<8x32xf32>
    %438 = arith.mulf %429, %437 : vector<8x32xf32>
    %c14 = arith.constant 14 : index
    %c0_130 = arith.constant 0 : index
    %c0_131 = arith.constant 0 : index
    %439 = vector.load %arg0[%c14, %c0_130, %c0_131] : memref<16x8x1xf32, #tpu.memory_space<vmem>>, vector<1x8x1xf32>
    %440 = vector.shape_cast %439 : vector<1x8x1xf32> to vector<8x1xf32>
    %441 = vector.broadcast %440 : vector<8x1xf32> to vector<8x128xf32>
    %442 = vector.broadcast %1 : vector<1x128xf32> to vector<8x128xf32>
    %443 = arith.mulf %441, %442 : vector<8x128xf32>
    %444 = vector.broadcast %2 : vector<1x128xf32> to vector<8x128xf32>
    %445 = arith.addf %443, %444 : vector<8x128xf32>
    %446 = arith.truncf %438 : vector<8x32xf32> to vector<8x32xbf16>
    %cst_132 = arith.constant dense<0.000000e+00> : vector<8x128xf32>
    %447 = tpu.matmul %446, %0, %cst_132 {dimension_numbers = #tpu.dot_dimension_numbers<[1], [0], [0], [1], [0, 0, 1, 1], [], []>} : vector<8x32xbf16>, vector<32x128xbf16>, vector<8x128xf32> -> vector<8x128xf32>
    %448 = arith.addf %445, %447 : vector<8x128xf32>
    %449 = arith.negf %448 : vector<8x128xf32>
    %450 = math.exp %449 : vector<8x128xf32>
    %cst_133 = arith.constant 1.000000e+00 : f32
    %451 = vector.broadcast %cst_133 : f32 to vector<8x128xf32>
    %452 = arith.addf %451, %450 : vector<8x128xf32>
    %453 = arith.divf %451, %452 : vector<8x128xf32>
    %454 = vector.extract_strided_slice %453 {offsets = [0, 0], sizes = [8, 32], strides = [1, 1]} : vector<8x128xf32> to vector<8x32xf32>
    %c96_i32_134 = arith.constant 96 : i32
    %455 = tpu.dynamic_rotate %453 by %c96_i32_134 dim 1 : vector<8x128xf32>, i32 -> vector<8x128xf32>
    %456 = vector.extract_strided_slice %455 {offsets = [0, 0], sizes = [8, 32], strides = [1, 1]} : vector<8x128xf32> to vector<8x32xf32>
    %c64_i32_135 = arith.constant 64 : i32
    %457 = tpu.dynamic_rotate %453 by %c64_i32_135 dim 1 : vector<8x128xf32>, i32 -> vector<8x128xf32>
    %458 = vector.extract_strided_slice %457 {offsets = [0, 0], sizes = [8, 32], strides = [1, 1]} : vector<8x128xf32> to vector<8x32xf32>
    %c32_i32_136 = arith.constant 32 : i32
    %459 = tpu.dynamic_rotate %453 by %c32_i32_136 dim 1 : vector<8x128xf32>, i32 -> vector<8x128xf32>
    %460 = vector.extract_strided_slice %459 {offsets = [0, 0], sizes = [8, 32], strides = [1, 1]} : vector<8x128xf32> to vector<8x32xf32>
    %cst_137 = arith.constant 2.000000e+00 : f32
    %461 = vector.broadcast %cst_137 : f32 to vector<8x32xf32>
    %462 = arith.mulf %461, %458 : vector<8x32xf32>
    %cst_138 = arith.constant 1.000000e+00 : f32
    %463 = vector.broadcast %cst_138 : f32 to vector<8x32xf32>
    %464 = arith.subf %462, %463 : vector<8x32xf32>
    %465 = arith.mulf %456, %436 : vector<8x32xf32>
    %466 = arith.mulf %454, %464 : vector<8x32xf32>
    %467 = arith.addf %465, %466 : vector<8x32xf32>
    %468 = math.tanh %467 : vector<8x32xf32>
    %469 = arith.mulf %460, %468 : vector<8x32xf32>
    %c15 = arith.constant 15 : index
    %c0_139 = arith.constant 0 : index
    %c0_140 = arith.constant 0 : index
    %470 = vector.load %arg0[%c15, %c0_139, %c0_140] : memref<16x8x1xf32, #tpu.memory_space<vmem>>, vector<1x8x1xf32>
    %471 = vector.shape_cast %470 : vector<1x8x1xf32> to vector<8x1xf32>
    %472 = vector.broadcast %471 : vector<8x1xf32> to vector<8x128xf32>
    %473 = vector.broadcast %1 : vector<1x128xf32> to vector<8x128xf32>
    %474 = arith.mulf %472, %473 : vector<8x128xf32>
    %475 = vector.broadcast %2 : vector<1x128xf32> to vector<8x128xf32>
    %476 = arith.addf %474, %475 : vector<8x128xf32>
    %477 = arith.truncf %469 : vector<8x32xf32> to vector<8x32xbf16>
    %cst_141 = arith.constant dense<0.000000e+00> : vector<8x128xf32>
    %478 = tpu.matmul %477, %0, %cst_141 {dimension_numbers = #tpu.dot_dimension_numbers<[1], [0], [0], [1], [0, 0, 1, 1], [], []>} : vector<8x32xbf16>, vector<32x128xbf16>, vector<8x128xf32> -> vector<8x128xf32>
    %479 = arith.addf %476, %478 : vector<8x128xf32>
    %480 = arith.negf %479 : vector<8x128xf32>
    %481 = math.exp %480 : vector<8x128xf32>
    %cst_142 = arith.constant 1.000000e+00 : f32
    %482 = vector.broadcast %cst_142 : f32 to vector<8x128xf32>
    %483 = arith.addf %482, %481 : vector<8x128xf32>
    %484 = arith.divf %482, %483 : vector<8x128xf32>
    %485 = vector.extract_strided_slice %484 {offsets = [0, 0], sizes = [8, 32], strides = [1, 1]} : vector<8x128xf32> to vector<8x32xf32>
    %c96_i32_143 = arith.constant 96 : i32
    %486 = tpu.dynamic_rotate %484 by %c96_i32_143 dim 1 : vector<8x128xf32>, i32 -> vector<8x128xf32>
    %487 = vector.extract_strided_slice %486 {offsets = [0, 0], sizes = [8, 32], strides = [1, 1]} : vector<8x128xf32> to vector<8x32xf32>
    %c64_i32_144 = arith.constant 64 : i32
    %488 = tpu.dynamic_rotate %484 by %c64_i32_144 dim 1 : vector<8x128xf32>, i32 -> vector<8x128xf32>
    %489 = vector.extract_strided_slice %488 {offsets = [0, 0], sizes = [8, 32], strides = [1, 1]} : vector<8x128xf32> to vector<8x32xf32>
    %c32_i32_145 = arith.constant 32 : i32
    %490 = tpu.dynamic_rotate %484 by %c32_i32_145 dim 1 : vector<8x128xf32>, i32 -> vector<8x128xf32>
    %491 = vector.extract_strided_slice %490 {offsets = [0, 0], sizes = [8, 32], strides = [1, 1]} : vector<8x128xf32> to vector<8x32xf32>
    %cst_146 = arith.constant 2.000000e+00 : f32
    %492 = vector.broadcast %cst_146 : f32 to vector<8x32xf32>
    %493 = arith.mulf %492, %489 : vector<8x32xf32>
    %cst_147 = arith.constant 1.000000e+00 : f32
    %494 = vector.broadcast %cst_147 : f32 to vector<8x32xf32>
    %495 = arith.subf %493, %494 : vector<8x32xf32>
    %496 = arith.mulf %487, %467 : vector<8x32xf32>
    %497 = arith.mulf %485, %495 : vector<8x32xf32>
    %498 = arith.addf %496, %497 : vector<8x32xf32>
    %499 = math.tanh %498 : vector<8x32xf32>
    %500 = arith.mulf %491, %499 : vector<8x32xf32>
    %c2_148 = arith.constant 2 : index
    %c0_149 = arith.constant 0 : index
    %501 = vector.load %arg2[%c2_148, %c0_149] : memref<4x128xf32, #tpu.memory_space<vmem>>, vector<1x32xf32>
    %c3_150 = arith.constant 3 : index
    %c0_151 = arith.constant 0 : index
    %502 = vector.load %arg2[%c3_150, %c0_151] : memref<4x128xf32, #tpu.memory_space<vmem>>, vector<1x1xf32>
    %503 = vector.broadcast %501 : vector<1x32xf32> to vector<8x32xf32>
    %504 = arith.mulf %500, %503 : vector<8x32xf32>
    %cst_152 = arith.constant dense<0.000000e+00> : vector<8xf32>
    %505 = vector.multi_reduction <add>, %504, %cst_152 [1] : vector<8x32xf32> to vector<8xf32>
    %506 = vector.shape_cast %505 : vector<8xf32> to vector<8x1xf32>
    %507 = vector.broadcast %502 : vector<1x1xf32> to vector<8x1xf32>
    %508 = arith.addf %506, %507 : vector<8x1xf32>
    %c0_153 = arith.constant 0 : index
    %c0_154 = arith.constant 0 : index
    %509 = vector.load %arg3[%c0_153, %c0_154] : memref<8x1xf32, #tpu.memory_space<vmem>>, vector<8x1xf32>
    tpu.vector_store %arg3[%c0_153, %c0_154], %508 {strides = array<i32>} : memref<8x1xf32, #tpu.memory_space<vmem>>, vector<8x1xf32>,
    return
  }
}

</mosaic_0001>

<bundles_post_ra>
// kernel: tpu_custom_call.1
= control target key start
LH: loop header
LB: loop body
LE: loop exit
PB: predicated region body
PF: predicated region fallthrough
CT: control target
= control target key end

     0   :  { %v1580_v0 = vmov 0.0   ;;  %vm1581_vm0 = vmmov 0   ;;  %v1582_v2 = vmov 0   ;;  %s1583_s21 = smov 96   ;;  %s1584_s22 = smov 64   ;;  %vm49_vm1 = vcmask 261120   ;;  %s1877_s1 = inlined_call_operand.vmem [shape: bf16[32,128], index: 1, kind: input, shape index: {}]   ;;  %s1878_s0 = inlined_call_operand.vmem [shape: f32[16,8,1], index: 0, kind: input, shape index: {}]   ;;  %s1879_s2 = inlined_call_operand.vmem [shape: f32[4,128], index: 2, kind: input, shape index: {}]   ;;  %s1880_s3 = inlined_call_operand.vmem [shape: f32[8,1], index: 3, kind: output, shape index: {}]  }
   0x1   :  { %1345 = vmatprep.subr.bf16.mxu0 %v1580_v0  ;;  %v1610_v1 = vld [vmem:[%s1877_s1] sm:$0xff]   ;;  %1349 = vmatprep.mubr.msk.bf16.mxu0 %vm1581_vm0, %v1580_v0  ;;  %v1619_v3 = vld [vmem:[%s1877_s1 + $0x8] sm:$0xff]   ;;  %s1585_s25 = smov 32   ;;  %v1239_v43 = vld [vmem:[%s1878_s0 + $0x10] sm:$0xff]  ;;  %vm1223_vm2 = vcmask 7168  }
   0x2   :  { %1479 = vset.pattern.permute.xlu0 %v1582_v2  ;;  %1353 = vmatprep.subr.bf16.mxu1 %v1580_v0  ;;  %v21_v4 = vld [vmem:[%s1878_s0] sm:$0xff]  ;;  %v1235_v19 = vld [vmem:[%s1878_s0 + $0x8] sm:$0xff] }
   0x3   :  { %1346 = vmatpush3.bf16.msra.mxu0 %v1610_v1  ;;  %1354 = vmatpush3.bf16.msra.mxu1 %v1610_v1  ;;  %v1642_v5 = vld [vmem:[%s1879_s2] ss:$0 sm:$0xff]  ;;  %v1648_v8 = vld [vmem:[%s1879_s2 + $0x1] ss:$0 sm:$0xff] }
   0x4   :  { %1347 = vmatprep.subr.bf16.mxu0 %v1580_v0  ;;  %24 = vperm.xlu0 %1479, %v21_v4  }
   0x5   :  { %1355 = vmatprep.subr.bf16.mxu1 %v1580_v0  ;;  %1357 = vmatprep.mubr.msk.bf16.mxu1 %vm1581_vm0, %v1580_v0 }
   0x7   :  { %1348 = vmatpush3.bf16.msra.mxu0 %v1619_v3  ;;  %1356 = vmatpush3.bf16.msra.mxu1 %v1619_v3 }
   0x8   :  { %1361 = vmatprep.subr.bf16.mxu0 %v1580_v0  ;;  %1369 = vmatprep.subr.bf16.mxu1 %v1580_v0 }
   0xa   :  { %1350 = vmatmul.mubr.bf16.vlgmr.msra.gmra.mrb[0].mxu0 %v1582_v2 }
   0xb   :  { %1362 = vmatpush3.bf16.msra.mxu0 %v1610_v1  ;;  %1365 = vmatprep.mubr.msk.bf16.mxu0 %vm1581_vm0, %v1580_v0 }
   0xc   :  { %1363 = vmatprep.subr.bf16.mxu0 %v1580_v0 }
   0xf   :  { %1364 = vmatpush3.bf16.msra.mxu0 %v1619_v3 }
  0x10   :  { %1377 = vmatprep.subr.bf16.mxu0 %v1580_v0 }
  0x83   :  { %v25_v6 = vpop.permute.xlu0 %24 }
  0x84   :  { %v31_v7 = vmul.f32 %v1642_v5, %v25_v6 }
  0x86   :  { %v36_v9 = vadd.f32 %v1648_v8, %v31_v7  ;;  %v1243_v7 = vld [vmem:[%s1878_s0 + $0x18] sm:$0xff] }
  0xdd   :  { %v87_v10 = vpop.f32.mrb[0].mxu0 }
  0xde   :  { %v93_v11 = vadd.f32 %v87_v10, %v36_v9  ;;  %v1351_v12 = vpop.f32.mrb[1].mxu0 }
  0xdf   :  { %v90_v13 = vpop.f32.mrb[2].mxu0 }
  0xe0   :  { %v1233_v14 = vmul.f32 -1.442695, %v93_v11  ;;  %v1352_v15 = vpop.f32.mrb[3].mxu0 }
  0xe2   :  { %1482 = vpow2.f32 %v1233_v14 }
  0xec   :  { %v1483_v16 = vpop.eup %1482 }
  0xed   :  { %v97_v17 = vadd.f32 1.0, %v1483_v16 }
  0xef   :  { %1484 = vrcp.f32 %v97_v17 }
  0xf9   :  { %v1485_v18 = vpop.eup %1484 }
  0xfa   :  { %100 = vrot.lane.b32.xlu1 %v1485_v18, %s1583_s21  ;;  %102 = vrot.lane.b32.xlu0 %v1485_v18, %s1584_s22 }
  0xfe   :  { %104 = vrot.lane.b32.xlu1 %v1485_v18, %s1585_s25  ;;  %117 = vperm.xlu0 %1479, %v1235_v19  }
 0x16c   :  { %v103_v20 = vpop.permute.xlu0 %102  ;;  %v101_v22 = vpop.permute.xlu1 %100 }
 0x16d   :  { %v106_v21 = vmul.f32 2.0, %v103_v20  ;;  %v108_v24 = vmul.f32 0.0, %v101_v22 }
 0x16f   :  { %v1234_v23 = vadd.f32 -1.0, %v106_v21 }
 0x170   :  { %v105_v28 = vpop.permute.xlu1 %104 }
 0x171   :  { %v109_v25 = vmul.f32 %v1485_v18, %v1234_v23 }
 0x173   :  { %v110_v26 = vadd.f32 %v109_v25, %v108_v24 }
 0x175   :  { %1486 = vtanh.f32 %v110_v26 }
 0x17d   :  { %v118_v31 = vpop.permute.xlu0 %117 }
 0x17e   :  { %v120_v32 = vmul.f32 %v1642_v5, %v118_v31 }
 0x17f   :  { %v1487_v27 = vpop.eup %1486 }
 0x180   :  { %v112_v29 = vmul.f32 %v1487_v27, %v105_v28  ;;  %v121_v33 = vadd.f32 %v1648_v8, %v120_v32  ;;  %v1247_v32 = vld [vmem:[%s1878_s0 + $0x20] sm:$0xff] }
 0x182   :  { %v122_v30 = vpack.c.bf16 %v112_v29, %v112_v29 }
 0x184   :  { %1358 = vmatmul.mubr.msk.bf16.vlgmr.msra.gmra.mrb[0].mxu1 %vm49_vm1, %v122_v30 }
 0x185   :  { %1370 = vmatpush3.bf16.msra.mxu1 %v1610_v1  ;;  %1373 = vmatprep.mubr.msk.bf16.mxu1 %vm1581_vm0, %v1580_v0 }
 0x186   :  { %1371 = vmatprep.subr.bf16.mxu1 %v1580_v0 }
 0x189   :  { %1372 = vmatpush3.bf16.msra.mxu1 %v1619_v3 }
 0x18a   :  { %1385 = vmatprep.subr.bf16.mxu1 %v1580_v0 }
 0x257   :  { %v160_v34 = vpop.f32.mrb[0].mxu1 }
 0x258   :  { %v166_v35 = vadd.f32 %v160_v34, %v121_v33  ;;  %v1359_v36 = vpop.f32.mrb[1].mxu1 }
 0x259   :  { %v163_v37 = vpop.f32.mrb[2].mxu1 }
 0x25a   :  { %v1237_v38 = vmul.f32 -1.442695, %v166_v35  ;;  %v1360_v39 = vpop.f32.mrb[3].mxu1 }
 0x25c   :  { %1488 = vpow2.f32 %v1237_v38 }
 0x266   :  { %v1489_v40 = vpop.eup %1488 }
 0x267   :  { %v170_v41 = vadd.f32 1.0, %v1489_v40 }
 0x269   :  { %1490 = vrcp.f32 %v170_v41 }
 0x273   :  { %v1491_v42 = vpop.eup %1490 }
 0x274   :  { %173 = vrot.lane.b32.xlu0 %v1491_v42, %s1583_s21  ;;  %175 = vrot.lane.b32.xlu1 %v1491_v42, %s1584_s22 }
 0x278   :  { %190 = vperm.xlu0 %1479, %v1239_v43   ;;  %177 = vrot.lane.b32.xlu1 %v1491_v42, %s1585_s25 }
 0x2e6   :  { %v176_v44 = vpop.permute.xlu1 %175  ;;  %v174_v46 = vpop.permute.xlu0 %173 }
 0x2e7   :  { %v179_v45 = vmul.f32 2.0, %v176_v44  ;;  %v181_v48 = vmul.f32 %v174_v46, %v110_v26 }
 0x2e9   :  { %v1238_v47 = vadd.f32 -1.0, %v179_v45 }
 0x2ea   :  { %v178_v52 = vpop.permute.xlu1 %177 }
 0x2eb   :  { %v182_v49 = vmul.f32 %v1491_v42, %v1238_v47 }
 0x2ed   :  { %v183_v50 = vadd.f32 %v182_v49, %v181_v48 }
 0x2ef   :  { %1492 = vtanh.f32 %v183_v50 }
 0x2f7   :  { %v191_v55 = vpop.permute.xlu0 %190 }
 0x2f8   :  { %v193_v56 = vmul.f32 %v1642_v5, %v191_v55 }
 0x2f9   :  { %v1493_v51 = vpop.eup %1492 }
 0x2fa   :  { %v185_v53 = vmul.f32 %v1493_v51, %v178_v52  ;;  %v194_v57 = vadd.f32 %v1648_v8, %v193_v56  ;;  %v1251_v56 = vld [vmem:[%s1878_s0 + $0x28] sm:$0xff] }
 0x2fc   :  { %v195_v54 = vpack.c.bf16 %v185_v53, %v185_v53 }
 0x2fe   :  { %1366 = vmatmul.mubr.msk.bf16.vlgmr.msra.gmra.mrb[4].mxu0 %vm49_vm1, %v195_v54 }
 0x2ff   :  { %1378 = vmatpush3.bf16.msra.mxu0 %v1610_v1  ;;  %1381 = vmatprep.mubr.msk.bf16.mxu0 %vm1581_vm0, %v1580_v0 }
 0x300   :  { %1379 = vmatprep.subr.bf16.mxu0 %v1580_v0 }
 0x303   :  { %1380 = vmatpush3.bf16.msra.mxu0 %v1619_v3 }
 0x304   :  { %1393 = vmatprep.subr.bf16.mxu0 %v1580_v0 }
 0x3d1   :  { %v233_v58 = vpop.f32.mrb[4].mxu0 }
 0x3d2   :  { %v239_v59 = vadd.f32 %v233_v58, %v194_v57  ;;  %v1367_v60 = vpop.f32.mrb[5].mxu0 }
 0x3d3   :  { %v236_v61 = vpop.f32.mrb[6].mxu0 }
 0x3d4   :  { %v1241_v62 = vmul.f32 -1.442695, %v239_v59  ;;  %v1368_v63 = vpop.f32.mrb[7].mxu0 }
 0x3d6   :  { %1494 = vpow2.f32 %v1241_v62 }
 0x3e0   :  { %v1495_v2 = vpop.eup %1494 }
 0x3e1   :  { %v243_v4 = vadd.f32 1.0, %v1495_v2 }
 0x3e3   :  { %1496 = vrcp.f32 %v243_v4 }
 0x3ed   :  { %v1497_v6 = vpop.eup %1496 }
 0x3ee   :  { %246 = vrot.lane.b32.xlu0 %v1497_v6, %s1583_s21  ;;  %248 = vrot.lane.b32.xlu1 %v1497_v6, %s1584_s22 }
 0x3f2   :  { %263 = vperm.xlu0 %1479, %v1243_v7   ;;  %250 = vrot.lane.b32.xlu1 %v1497_v6, %s1585_s25 }
 0x460   :  { %v249_v9 = vpop.permute.xlu1 %248  ;;  %v247_v11 = vpop.permute.xlu0 %246 }
 0x461   :  { %v252_v10 = vmul.f32 2.0, %v249_v9  ;;  %v254_v13 = vmul.f32 %v247_v11, %v183_v50 }
 0x463   :  { %v1242_v12 = vadd.f32 -1.0, %v252_v10 }
 0x464   :  { %v251_v17 = vpop.permute.xlu1 %250 }
 0x465   :  { %v255_v14 = vmul.f32 %v1497_v6, %v1242_v12 }
 0x467   :  { %v256_v15 = vadd.f32 %v255_v14, %v254_v13 }
 0x469   :  { %1498 = vtanh.f32 %v256_v15 }
 0x471   :  { %v264_v20 = vpop.permute.xlu0 %263 }
 0x472   :  { %v266_v21 = vmul.f32 %v1642_v5, %v264_v20 }
 0x473   :  { %v1499_v16 = vpop.eup %1498 }
 0x474   :  { %v258_v18 = vmul.f32 %v1499_v16, %v251_v17  ;;  %v267_v22 = vadd.f32 %v1648_v8, %v266_v21  ;;  %v1255_v21 = vld [vmem:[%s1878_s0 + $0x30] sm:$0xff] }
 0x476   :  { %v268_v19 = vpack.c.bf16 %v258_v18, %v258_v18 }
 0x478   :  { %1374 = vmatmul.mubr.msk.bf16.vlgmr.msra.gmra.mrb[4].mxu1 %vm49_vm1, %v268_v19 }
 0x479   :  { %1386 = vmatpush3.bf16.msra.mxu1 %v1610_v1  ;;  %1389 = vmatprep.mubr.msk.bf16.mxu1 %vm1581_vm0, %v1580_v0 }
 0x47a   :  { %1387 = vmatprep.subr.bf16.mxu1 %v1580_v0 }
 0x47d   :  { %1388 = vmatpush3.bf16.msra.mxu1 %v1619_v3 }
 0x47e   :  { %1401 = vmatprep.subr.bf16.mxu1 %v1580_v0 }
 0x54b   :  { %v306_v23 = vpop.f32.mrb[4].mxu1 }
 0x54c   :  { %v312_v24 = vadd.f32 %v306_v23, %v267_v22  ;;  %v1375_v25 = vpop.f32.mrb[5].mxu1 }
 0x54d   :  { %v309_v26 = vpop.f32.mrb[6].mxu1 }
 0x54e   :  { %v1245_v27 = vmul.f32 -1.442695, %v312_v24  ;;  %v1376_v28 = vpop.f32.mrb[7].mxu1 }
 0x550   :  { %1500 = vpow2.f32 %v1245_v27 }
 0x55a   :  { %v1501_v29 = vpop.eup %1500 }
 0x55b   :  { %v316_v30 = vadd.f32 1.0, %v1501_v29 }
 0x55d   :  { %1502 = vrcp.f32 %v316_v30 }
 0x567   :  { %v1503_v31 = vpop.eup %1502 }
 0x568   :  { %319 = vrot.lane.b32.xlu0 %v1503_v31, %s1583_s21  ;;  %321 = vrot.lane.b32.xlu1 %v1503_v31, %s1584_s22 }
 0x56c   :  { %336 = vperm.xlu0 %1479, %v1247_v32   ;;  %323 = vrot.lane.b32.xlu1 %v1503_v31, %s1585_s25 }
 0x5da   :  { %v322_v33 = vpop.permute.xlu1 %321  ;;  %v320_v35 = vpop.permute.xlu0 %319 }
 0x5db   :  { %v325_v34 = vmul.f32 2.0, %v322_v33  ;;  %v327_v37 = vmul.f32 %v320_v35, %v256_v15 }
 0x5dd   :  { %v1246_v36 = vadd.f32 -1.0, %v325_v34 }
 0x5de   :  { %v324_v41 = vpop.permute.xlu1 %323 }
 0x5df   :  { %v328_v38 = vmul.f32 %v1503_v31, %v1246_v36 }
 0x5e1   :  { %v329_v39 = vadd.f32 %v328_v38, %v327_v37 }
 0x5e3   :  { %1504 = vtanh.f32 %v329_v39 }
 0x5eb   :  { %v337_v44 = vpop.permute.xlu0 %336 }
 0x5ec   :  { %v339_v45 = vmul.f32 %v1642_v5, %v337_v44 }
 0x5ed   :  { %v1505_v40 = vpop.eup %1504 }
 0x5ee   :  { %v331_v42 = vmul.f32 %v1505_v40, %v324_v41  ;;  %v340_v46 = vadd.f32 %v1648_v8, %v339_v45  ;;  %v1259_v45 = vld [vmem:[%s1878_s0 + $0x38] sm:$0xff] }
 0x5f0   :  { %v341_v43 = vpack.c.bf16 %v331_v42, %v331_v42 }
 0x5f2   :  { %1382 = vmatmul.mubr.msk.bf16.vlgmr.msra.gmra.mrb[8].mxu0 %vm49_vm1, %v341_v43 }
 0x5f3   :  { %1394 = vmatpush3.bf16.msra.mxu0 %v1610_v1  ;;  %1397 = vmatprep.mubr.msk.bf16.mxu0 %vm1581_vm0, %v1580_v0 }
 0x5f4   :  { %1395 = vmatprep.subr.bf16.mxu0 %v1580_v0 }
 0x5f7   :  { %1396 = vmatpush3.bf16.msra.mxu0 %v1619_v3 }
 0x5f8   :  { %1409 = vmatprep.subr.bf16.mxu0 %v1580_v0 }
 0x6c5   :  { %v379_v47 = vpop.f32.mrb[8].mxu0 }
 0x6c6   :  { %v385_v48 = vadd.f32 %v379_v47, %v340_v46  ;;  %v1383_v49 = vpop.f32.mrb[9].mxu0 }
 0x6c7   :  { %v382_v50 = vpop.f32.mrb[10].mxu0 }
 0x6c8   :  { %v1249_v51 = vmul.f32 -1.442695, %v385_v48  ;;  %v1384_v52 = vpop.f32.mrb[11].mxu0 }
 0x6ca   :  { %1506 = vpow2.f32 %v1249_v51 }
 0x6d4   :  { %v1507_v53 = vpop.eup %1506 }
 0x6d5   :  { %v389_v54 = vadd.f32 1.0, %v1507_v53 }
 0x6d7   :  { %1508 = vrcp.f32 %v389_v54 }
 0x6e1   :  { %v1509_v55 = vpop.eup %1508 }
 0x6e2   :  { %392 = vrot.lane.b32.xlu0 %v1509_v55, %s1583_s21  ;;  %394 = vrot.lane.b32.xlu1 %v1509_v55, %s1584_s22 }
 0x6e6   :  { %409 = vperm.xlu0 %1479, %v1251_v56   ;;  %396 = vrot.lane.b32.xlu1 %v1509_v55, %s1585_s25 }
 0x754   :  { %v395_v57 = vpop.permute.xlu1 %394  ;;  %v393_v59 = vpop.permute.xlu0 %392 }
 0x755   :  { %v398_v58 = vmul.f32 2.0, %v395_v57  ;;  %v400_v61 = vmul.f32 %v393_v59, %v329_v39 }
 0x757   :  { %v1250_v60 = vadd.f32 -1.0, %v398_v58 }
 0x758   :  { %v397_v4 = vpop.permute.xlu1 %396 }
 0x759   :  { %v401_v62 = vmul.f32 %v1509_v55, %v1250_v60 }
 0x75b   :  { %v402_v63 = vadd.f32 %v401_v62, %v400_v61 }
 0x75d   :  { %1510 = vtanh.f32 %v402_v63 }
 0x765   :  { %v410_v9 = vpop.permute.xlu0 %409 }
 0x766   :  { %v412_v10 = vmul.f32 %v1642_v5, %v410_v9 }
 0x767   :  { %v1511_v2 = vpop.eup %1510 }
 0x768   :  { %v404_v6 = vmul.f32 %v1511_v2, %v397_v4  ;;  %v413_v11 = vadd.f32 %v1648_v8, %v412_v10  ;;  %v1263_v10 = vld [vmem:[%s1878_s0 + $0x40] sm:$0xff] }
 0x76a   :  { %v414_v7 = vpack.c.bf16 %v404_v6, %v404_v6 }
 0x76c   :  { %1390 = vmatmul.mubr.msk.bf16.vlgmr.msra.gmra.mrb[8].mxu1 %vm49_vm1, %v414_v7 }
 0x76d   :  { %1402 = vmatpush3.bf16.msra.mxu1 %v1610_v1  ;;  %1405 = vmatprep.mubr.msk.bf16.mxu1 %vm1581_vm0, %v1580_v0 }
 0x76e   :  { %1403 = vmatprep.subr.bf16.mxu1 %v1580_v0 }
 0x771   :  { %1404 = vmatpush3.bf16.msra.mxu1 %v1619_v3 }
 0x772   :  { %1417 = vmatprep.subr.bf16.mxu1 %v1580_v0 }
 0x83f   :  { %v452_v12 = vpop.f32.mrb[8].mxu1 }
 0x840   :  { %v458_v13 = vadd.f32 %v452_v12, %v413_v11  ;;  %v1391_v14 = vpop.f32.mrb[9].mxu1 }
 0x841   :  { %v455_v15 = vpop.f32.mrb[10].mxu1 }
 0x842   :  { %v1253_v16 = vmul.f32 -1.442695, %v458_v13  ;;  %v1392_v17 = vpop.f32.mrb[11].mxu1 }
 0x844   :  { %1512 = vpow2.f32 %v1253_v16 }
 0x84e   :  { %v1513_v18 = vpop.eup %1512 }
 0x84f   :  { %v462_v19 = vadd.f32 1.0, %v1513_v18 }
 0x851   :  { %1514 = vrcp.f32 %v462_v19 }
 0x85b   :  { %v1515_v20 = vpop.eup %1514 }
 0x85c   :  { %465 = vrot.lane.b32.xlu0 %v1515_v20, %s1583_s21  ;;  %467 = vrot.lane.b32.xlu1 %v1515_v20, %s1584_s22 }
 0x860   :  { %482 = vperm.xlu0 %1479, %v1255_v21   ;;  %469 = vrot.lane.b32.xlu1 %v1515_v20, %s1585_s25 }
 0x8ce   :  { %v468_v22 = vpop.permute.xlu1 %467  ;;  %v466_v24 = vpop.permute.xlu0 %465 }
 0x8cf   :  { %v471_v23 = vmul.f32 2.0, %v468_v22  ;;  %v473_v26 = vmul.f32 %v466_v24, %v402_v63 }
 0x8d1   :  { %v1254_v25 = vadd.f32 -1.0, %v471_v23 }
 0x8d2   :  { %v470_v30 = vpop.permute.xlu1 %469 }
 0x8d3   :  { %v474_v27 = vmul.f32 %v1515_v20, %v1254_v25 }
 0x8d5   :  { %v475_v28 = vadd.f32 %v474_v27, %v473_v26 }
 0x8d7   :  { %1516 = vtanh.f32 %v475_v28 }
 0x8df   :  { %v483_v33 = vpop.permute.xlu0 %482 }
 0x8e0   :  { %v485_v34 = vmul.f32 %v1642_v5, %v483_v33 }
 0x8e1   :  { %v1517_v29 = vpop.eup %1516 }
 0x8e2   :  { %v477_v31 = vmul.f32 %v1517_v29, %v470_v30  ;;  %v486_v35 = vadd.f32 %v1648_v8, %v485_v34  ;;  %v1267_v34 = vld [vmem:[%s1878_s0 + $0x48] sm:$0xff] }
 0x8e4   :  { %v487_v32 = vpack.c.bf16 %v477_v31, %v477_v31 }
 0x8e6   :  { %1398 = vmatmul.mubr.msk.bf16.vlgmr.msra.gmra.mrb[12].mxu0 %vm49_vm1, %v487_v32 }
 0x8e7   :  { %1410 = vmatpush3.bf16.msra.mxu0 %v1610_v1  ;;  %1413 = vmatprep.mubr.msk.bf16.mxu0 %vm1581_vm0, %v1580_v0 }
 0x8e8   :  { %1411 = vmatprep.subr.bf16.mxu0 %v1580_v0 }
 0x8eb   :  { %1412 = vmatpush3.bf16.msra.mxu0 %v1619_v3 }
 0x8ec   :  { %1425 = vmatprep.subr.bf16.mxu0 %v1580_v0 }
 0x9b9   :  { %v525_v36 = vpop.f32.mrb[12].mxu0 }
 0x9ba   :  { %v531_v37 = vadd.f32 %v525_v36, %v486_v35  ;;  %v1399_v38 = vpop.f32.mrb[13].mxu0 }
 0x9bb   :  { %v528_v39 = vpop.f32.mrb[14].mxu0 }
 0x9bc   :  { %v1257_v40 = vmul.f32 -1.442695, %v531_v37  ;;  %v1400_v41 = vpop.f32.mrb[15].mxu0 }
 0x9be   :  { %1518 = vpow2.f32 %v1257_v40 }
 0x9c8   :  { %v1519_v42 = vpop.eup %1518 }
 0x9c9   :  { %v535_v43 = vadd.f32 1.0, %v1519_v42 }
 0x9cb   :  { %1520 = vrcp.f32 %v535_v43 }
 0x9d5   :  { %v1521_v44 = vpop.eup %1520 }
 0x9d6   :  { %538 = vrot.lane.b32.xlu0 %v1521_v44, %s1583_s21  ;;  %540 = vrot.lane.b32.xlu1 %v1521_v44, %s1584_s22 }
 0x9da   :  { %555 = vperm.xlu0 %1479, %v1259_v45   ;;  %542 = vrot.lane.b32.xlu1 %v1521_v44, %s1585_s25 }
 0xa48   :  { %v541_v46 = vpop.permute.xlu1 %540  ;;  %v539_v48 = vpop.permute.xlu0 %538 }
 0xa49   :  { %v544_v47 = vmul.f32 2.0, %v541_v46  ;;  %v546_v50 = vmul.f32 %v539_v48, %v475_v28 }
 0xa4b   :  { %v1258_v49 = vadd.f32 -1.0, %v544_v47 }
 0xa4c   :  { %v543_v54 = vpop.permute.xlu1 %542 }
 0xa4d   :  { %v547_v51 = vmul.f32 %v1521_v44, %v1258_v49 }
 0xa4f   :  { %v548_v52 = vadd.f32 %v547_v51, %v546_v50 }
 0xa51   :  { %1522 = vtanh.f32 %v548_v52 }
 0xa59   :  { %v556_v57 = vpop.permute.xlu0 %555 }
 0xa5a   :  { %v558_v58 = vmul.f32 %v1642_v5, %v556_v57 }
 0xa5b   :  { %v1523_v53 = vpop.eup %1522 }
 0xa5c   :  { %v550_v55 = vmul.f32 %v1523_v53, %v543_v54  ;;  %v559_v59 = vadd.f32 %v1648_v8, %v558_v58  ;;  %v1271_v58 = vld [vmem:[%s1878_s0 + $0x50] sm:$0xff] }
 0xa5e   :  { %v560_v56 = vpack.c.bf16 %v550_v55, %v550_v55 }
 0xa60   :  { %1406 = vmatmul.mubr.msk.bf16.vlgmr.msra.gmra.mrb[12].mxu1 %vm49_vm1, %v560_v56 }
 0xa61   :  { %1418 = vmatpush3.bf16.msra.mxu1 %v1610_v1  ;;  %1421 = vmatprep.mubr.msk.bf16.mxu1 %vm1581_vm0, %v1580_v0 }
 0xa62   :  { %1419 = vmatprep.subr.bf16.mxu1 %v1580_v0 }
 0xa65   :  { %1420 = vmatpush3.bf16.msra.mxu1 %v1619_v3 }
 0xa66   :  { %1433 = vmatprep.subr.bf16.mxu1 %v1580_v0 }
 0xb33   :  { %v598_v60 = vpop.f32.mrb[12].mxu1 }
 0xb34   :  { %v604_v61 = vadd.f32 %v598_v60, %v559_v59  ;;  %v1407_v62 = vpop.f32.mrb[13].mxu1 }
 0xb35   :  { %v601_v63 = vpop.f32.mrb[14].mxu1 }
 0xb36   :  { %v1261_v2 = vmul.f32 -1.442695, %v604_v61  ;;  %v1408_v4 = vpop.f32.mrb[15].mxu1 }
 0xb38   :  { %1524 = vpow2.f32 %v1261_v2 }
 0xb42   :  { %v1525_v6 = vpop.eup %1524 }
 0xb43   :  { %v608_v7 = vadd.f32 1.0, %v1525_v6 }
 0xb45   :  { %1526 = vrcp.f32 %v608_v7 }
 0xb4f   :  { %v1527_v9 = vpop.eup %1526 }
 0xb50   :  { %611 = vrot.lane.b32.xlu0 %v1527_v9, %s1583_s21  ;;  %613 = vrot.lane.b32.xlu1 %v1527_v9, %s1584_s22 }
 0xb54   :  { %628 = vperm.xlu0 %1479, %v1263_v10   ;;  %615 = vrot.lane.b32.xlu1 %v1527_v9, %s1585_s25 }
 0xbc2   :  { %v614_v11 = vpop.permute.xlu1 %613  ;;  %v612_v13 = vpop.permute.xlu0 %611 }
 0xbc3   :  { %v617_v12 = vmul.f32 2.0, %v614_v11  ;;  %v619_v15 = vmul.f32 %v612_v13, %v548_v52 }
 0xbc5   :  { %v1262_v14 = vadd.f32 -1.0, %v617_v12 }
 0xbc6   :  { %v616_v19 = vpop.permute.xlu1 %615 }
 0xbc7   :  { %v620_v16 = vmul.f32 %v1527_v9, %v1262_v14 }
 0xbc9   :  { %v621_v17 = vadd.f32 %v620_v16, %v619_v15 }
 0xbcb   :  { %1528 = vtanh.f32 %v621_v17 }
 0xbd3   :  { %v629_v22 = vpop.permute.xlu0 %628 }
 0xbd4   :  { %v631_v23 = vmul.f32 %v1642_v5, %v629_v22 }
 0xbd5   :  { %v1529_v18 = vpop.eup %1528 }
 0xbd6   :  { %v623_v20 = vmul.f32 %v1529_v18, %v616_v19  ;;  %v632_v24 = vadd.f32 %v1648_v8, %v631_v23  ;;  %v1275_v23 = vld [vmem:[%s1878_s0 + $0x58] sm:$0xff] }
 0xbd8   :  { %v633_v21 = vpack.c.bf16 %v623_v20, %v623_v20 }
 0xbda   :  { %1414 = vmatmul.mubr.msk.bf16.vlgmr.msra.gmra.mrb[16].mxu0 %vm49_vm1, %v633_v21 }
 0xbdb   :  { %1426 = vmatpush3.bf16.msra.mxu0 %v1610_v1  ;;  %1429 = vmatprep.mubr.msk.bf16.mxu0 %vm1581_vm0, %v1580_v0 }
 0xbdc   :  { %1427 = vmatprep.subr.bf16.mxu0 %v1580_v0 }
 0xbdf   :  { %1428 = vmatpush3.bf16.msra.mxu0 %v1619_v3 }
 0xbe0   :  { %1441 = vmatprep.subr.bf16.mxu0 %v1580_v0 }
 0xcad   :  { %v671_v25 = vpop.f32.mrb[16].mxu0 }
 0xcae   :  { %v677_v26 = vadd.f32 %v671_v25, %v632_v24  ;;  %v1415_v27 = vpop.f32.mrb[17].mxu0 }
 0xcaf   :  { %v674_v28 = vpop.f32.mrb[18].mxu0 }
 0xcb0   :  { %v1265_v29 = vmul.f32 -1.442695, %v677_v26  ;;  %v1416_v30 = vpop.f32.mrb[19].mxu0 }
 0xcb2   :  { %1530 = vpow2.f32 %v1265_v29 }
 0xcbc   :  { %v1531_v31 = vpop.eup %1530 }
 0xcbd   :  { %v681_v32 = vadd.f32 1.0, %v1531_v31 }
 0xcbf   :  { %1532 = vrcp.f32 %v681_v32 }
 0xcc9   :  { %v1533_v33 = vpop.eup %1532 }
 0xcca   :  { %684 = vrot.lane.b32.xlu0 %v1533_v33, %s1583_s21  ;;  %686 = vrot.lane.b32.xlu1 %v1533_v33, %s1584_s22 }
 0xcce   :  { %701 = vperm.xlu0 %1479, %v1267_v34   ;;  %688 = vrot.lane.b32.xlu1 %v1533_v33, %s1585_s25 }
 0xd3c   :  { %v687_v35 = vpop.permute.xlu1 %686  ;;  %v685_v37 = vpop.permute.xlu0 %684 }
 0xd3d   :  { %v690_v36 = vmul.f32 2.0, %v687_v35  ;;  %v692_v39 = vmul.f32 %v685_v37, %v621_v17 }
 0xd3f   :  { %v1266_v38 = vadd.f32 -1.0, %v690_v36 }
 0xd40   :  { %v689_v43 = vpop.permute.xlu1 %688 }
 0xd41   :  { %v693_v40 = vmul.f32 %v1533_v33, %v1266_v38 }
 0xd43   :  { %v694_v41 = vadd.f32 %v693_v40, %v692_v39 }
 0xd45   :  { %1534 = vtanh.f32 %v694_v41 }
 0xd4d   :  { %v702_v46 = vpop.permute.xlu0 %701 }
 0xd4e   :  { %v704_v47 = vmul.f32 %v1642_v5, %v702_v46 }
 0xd4f   :  { %v1535_v42 = vpop.eup %1534 }
 0xd50   :  { %v696_v44 = vmul.f32 %v1535_v42, %v689_v43  ;;  %v705_v48 = vadd.f32 %v1648_v8, %v704_v47  ;;  %v1279_v47 = vld [vmem:[%s1878_s0 + $0x60] sm:$0xff] }
 0xd52   :  { %v706_v45 = vpack.c.bf16 %v696_v44, %v696_v44 }
 0xd54   :  { %1422 = vmatmul.mubr.msk.bf16.vlgmr.msra.gmra.mrb[16].mxu1 %vm49_vm1, %v706_v45 }
 0xd55   :  { %1434 = vmatpush3.bf16.msra.mxu1 %v1610_v1  ;;  %1437 = vmatprep.mubr.msk.bf16.mxu1 %vm1581_vm0, %v1580_v0 }
 0xd56   :  { %1435 = vmatprep.subr.bf16.mxu1 %v1580_v0 }
 0xd59   :  { %1436 = vmatpush3.bf16.msra.mxu1 %v1619_v3 }
 0xd5a   :  { %1449 = vmatprep.subr.bf16.mxu1 %v1580_v0 }
 0xe27   :  { %v744_v49 = vpop.f32.mrb[16].mxu1 }
 0xe28   :  { %v750_v50 = vadd.f32 %v744_v49, %v705_v48  ;;  %v1423_v51 = vpop.f32.mrb[17].mxu1 }
 0xe29   :  { %v747_v52 = vpop.f32.mrb[18].mxu1 }
 0xe2a   :  { %v1269_v53 = vmul.f32 -1.442695, %v750_v50  ;;  %v1424_v54 = vpop.f32.mrb[19].mxu1 }
 0xe2c   :  { %1536 = vpow2.f32 %v1269_v53 }
 0xe36   :  { %v1537_v55 = vpop.eup %1536 }
 0xe37   :  { %v754_v56 = vadd.f32 1.0, %v1537_v55 }
 0xe39   :  { %1538 = vrcp.f32 %v754_v56 }
 0xe43   :  { %v1539_v57 = vpop.eup %1538 }
 0xe44   :  { %757 = vrot.lane.b32.xlu0 %v1539_v57, %s1583_s21  ;;  %759 = vrot.lane.b32.xlu1 %v1539_v57, %s1584_s22 }
 0xe48   :  { %774 = vperm.xlu0 %1479, %v1271_v58   ;;  %761 = vrot.lane.b32.xlu1 %v1539_v57, %s1585_s25 }
 0xeb6   :  { %v760_v59 = vpop.permute.xlu1 %759  ;;  %v758_v61 = vpop.permute.xlu0 %757 }
 0xeb7   :  { %v763_v60 = vmul.f32 2.0, %v760_v59  ;;  %v765_v63 = vmul.f32 %v758_v61, %v694_v41 }
 0xeb9   :  { %v1270_v62 = vadd.f32 -1.0, %v763_v60 }
 0xeba   :  { %v762_v7 = vpop.permute.xlu1 %761 }
 0xebb   :  { %v766_v2 = vmul.f32 %v1539_v57, %v1270_v62 }
 0xebd   :  { %v767_v4 = vadd.f32 %v766_v2, %v765_v63 }
 0xebf   :  { %1540 = vtanh.f32 %v767_v4 }
 0xec7   :  { %v775_v11 = vpop.permute.xlu0 %774 }
 0xec8   :  { %v777_v12 = vmul.f32 %v1642_v5, %v775_v11 }
 0xec9   :  { %v1541_v6 = vpop.eup %1540 }
 0xeca   :  { %v769_v9 = vmul.f32 %v1541_v6, %v762_v7  ;;  %v778_v13 = vadd.f32 %v1648_v8, %v777_v12  ;;  %v1283_v12 = vld [vmem:[%s1878_s0 + $0x68] sm:$0xff] }
 0xecc   :  { %v779_v10 = vpack.c.bf16 %v769_v9, %v769_v9 }
 0xece   :  { %1430 = vmatmul.mubr.msk.bf16.vlgmr.msra.gmra.mrb[20].mxu0 %vm49_vm1, %v779_v10 }
 0xecf   :  { %1442 = vmatpush3.bf16.msra.mxu0 %v1610_v1  ;;  %1445 = vmatprep.mubr.msk.bf16.mxu0 %vm1581_vm0, %v1580_v0 }
 0xed0   :  { %1443 = vmatprep.subr.bf16.mxu0 %v1580_v0 }
 0xed3   :  { %1444 = vmatpush3.bf16.msra.mxu0 %v1619_v3 }
 0xed4   :  { %1457 = vmatprep.subr.bf16.mxu0 %v1580_v0 }
 0xfa1   :  { %v817_v14 = vpop.f32.mrb[20].mxu0 }
 0xfa2   :  { %v823_v15 = vadd.f32 %v817_v14, %v778_v13  ;;  %v1431_v16 = vpop.f32.mrb[21].mxu0 }
 0xfa3   :  { %v820_v17 = vpop.f32.mrb[22].mxu0 }
 0xfa4   :  { %v1273_v18 = vmul.f32 -1.442695, %v823_v15  ;;  %v1432_v19 = vpop.f32.mrb[23].mxu0 }
 0xfa6   :  { %1542 = vpow2.f32 %v1273_v18 }
 0xfb0   :  { %v1543_v20 = vpop.eup %1542 }
 0xfb1   :  { %v827_v21 = vadd.f32 1.0, %v1543_v20 }
 0xfb3   :  { %1544 = vrcp.f32 %v827_v21 }
 0xfbd   :  { %v1545_v22 = vpop.eup %1544 }
 0xfbe   :  { %830 = vrot.lane.b32.xlu0 %v1545_v22, %s1583_s21  ;;  %832 = vrot.lane.b32.xlu1 %v1545_v22, %s1584_s22 }
 0xfc2   :  { %847 = vperm.xlu0 %1479, %v1275_v23   ;;  %834 = vrot.lane.b32.xlu1 %v1545_v22, %s1585_s25 }
0x1030   :  { %v833_v24 = vpop.permute.xlu1 %832  ;;  %v831_v26 = vpop.permute.xlu0 %830 }
0x1031   :  { %v836_v25 = vmul.f32 2.0, %v833_v24  ;;  %v838_v28 = vmul.f32 %v831_v26, %v767_v4 }
0x1033   :  { %v1274_v27 = vadd.f32 -1.0, %v836_v25 }
0x1034   :  { %v835_v32 = vpop.permute.xlu1 %834 }
0x1035   :  { %v839_v29 = vmul.f32 %v1545_v22, %v1274_v27 }
0x1037   :  { %v840_v30 = vadd.f32 %v839_v29, %v838_v28 }
0x1039   :  { %1546 = vtanh.f32 %v840_v30 }
0x1041   :  { %v848_v35 = vpop.permute.xlu0 %847 }
0x1042   :  { %v850_v36 = vmul.f32 %v1642_v5, %v848_v35 }
0x1043   :  { %v1547_v31 = vpop.eup %1546 }
0x1044   :  { %v842_v33 = vmul.f32 %v1547_v31, %v835_v32  ;;  %v851_v37 = vadd.f32 %v1648_v8, %v850_v36 }
0x1046   :  { %v852_v34 = vpack.c.bf16 %v842_v33, %v842_v33 }
0x1048   :  { %1438 = vmatmul.mubr.msk.bf16.vlgmr.msra.gmra.mrb[20].mxu1 %vm49_vm1, %v852_v34 }
0x1049   :  { %1450 = vmatpush3.bf16.msra.mxu1 %v1610_v1  ;;  %1453 = vmatprep.mubr.msk.bf16.mxu1 %vm1581_vm0, %v1580_v0 }
0x104a   :  { %1451 = vmatprep.subr.bf16.mxu1 %v1580_v0 }
0x104d   :  { %1452 = vmatpush3.bf16.msra.mxu1 %v1619_v3 }
0x104e   :  { %1465 = vmatprep.subr.bf16.mxu1 %v1580_v0 }
0x111b   :  { %v890_v38 = vpop.f32.mrb[20].mxu1 }
0x111c   :  { %v896_v39 = vadd.f32 %v890_v38, %v851_v37  ;;  %v1439_v40 = vpop.f32.mrb[21].mxu1 }
0x111d   :  { %v893_v41 = vpop.f32.mrb[22].mxu1 }
0x111e   :  { %v1277_v42 = vmul.f32 -1.442695, %v896_v39  ;;  %v1440_v43 = vpop.f32.mrb[23].mxu1 }
0x1120   :  { %1548 = vpow2.f32 %v1277_v42 }
0x112a   :  { %v1549_v44 = vpop.eup %1548 }
0x112b   :  { %v900_v45 = vadd.f32 1.0, %v1549_v44  ;;  %v1578_v44 = vld [vmem:[%s1879_s2] ss:$0 sm:$0xff] }
0x112d   :  { %1550 = vrcp.f32 %v900_v45 }
0x1137   :  { %v1551_v46 = vpop.eup %1550 }
0x1138   :  { %903 = vrot.lane.b32.xlu0 %v1551_v46, %s1583_s21  ;;  %905 = vrot.lane.b32.xlu1 %v1551_v46, %s1584_s22 }
0x113c   :  { %920 = vperm.xlu0 %1479, %v1279_v47   ;;  %907 = vrot.lane.b32.xlu1 %v1551_v46, %s1585_s25 }
0x11aa   :  { %v906_v48 = vpop.permute.xlu1 %905  ;;  %v904_v50 = vpop.permute.xlu0 %903 }
0x11ab   :  { %v909_v49 = vmul.f32 2.0, %v906_v48  ;;  %v911_v52 = vmul.f32 %v904_v50, %v840_v30 }
0x11ad   :  { %v1278_v51 = vadd.f32 -1.0, %v909_v49 }
0x11ae   :  { %v908_v56 = vpop.permute.xlu1 %907 }
0x11af   :  { %v912_v53 = vmul.f32 %v1551_v46, %v1278_v51  ;;  %v1579_v46 = vld [vmem:[%s1879_s2 + $0x1] ss:$0 sm:$0xff] }
0x11b1   :  { %v913_v54 = vadd.f32 %v912_v53, %v911_v52 }
0x11b3   :  { %1552 = vtanh.f32 %v913_v54 }
0x11bb   :  { %v921_v59 = vpop.permute.xlu0 %920 }
0x11bc   :  { %v923_v60 = vmul.f32 %v1642_v5, %v921_v59 }
0x11bd   :  { %v1553_v55 = vpop.eup %1552 }
0x11be   :  { %v915_v57 = vmul.f32 %v1553_v55, %v908_v56  ;;  %v924_v61 = vadd.f32 %v1648_v8, %v923_v60 }
0x11c0   :  { %v925_v58 = vpack.c.bf16 %v915_v57, %v915_v57  ;;  %v1291_v57 = vld [vmem:[%s1878_s0 + $0x78] sm:$0xff] }
0x11c2   :  { %1446 = vmatmul.mubr.msk.bf16.vlgmr.msra.gmra.mrb[24].mxu0 %vm49_vm1, %v925_v58 }
0x11c3   :  { %1458 = vmatpush3.bf16.msra.mxu0 %v1610_v1  ;;  %1461 = vmatprep.mubr.msk.bf16.mxu0 %vm1581_vm0, %v1580_v0 }
0x11c4   :  { %1459 = vmatprep.subr.bf16.mxu0 %v1580_v0 }
0x11c7   :  { %1460 = vmatpush3.bf16.msra.mxu0 %v1619_v3 }
0x1295   :  { %v963_v62 = vpop.f32.mrb[24].mxu0 }
0x1296   :  { %v969_v63 = vadd.f32 %v963_v62, %v924_v61  ;;  %v1447_v2 = vpop.f32.mrb[25].mxu0 }
0x1297   :  { %v966_v4 = vpop.f32.mrb[26].mxu0 }
0x1298   :  { %v1281_v6 = vmul.f32 -1.442695, %v969_v63  ;;  %v1448_v7 = vpop.f32.mrb[27].mxu0 }
0x129a   :  { %1554 = vpow2.f32 %v1281_v6 }
0x12a4   :  { %v1555_v9 = vpop.eup %1554 }
0x12a5   :  { %v973_v10 = vadd.f32 1.0, %v1555_v9 }
0x12a7   :  { %1556 = vrcp.f32 %v973_v10 }
0x12b1   :  { %v1557_v11 = vpop.eup %1556 }
0x12b2   :  { %976 = vrot.lane.b32.xlu0 %v1557_v11, %s1583_s21  ;;  %978 = vrot.lane.b32.xlu1 %v1557_v11, %s1584_s22 }
0x12b6   :  { %993 = vperm.xlu0 %1479, %v1283_v12   ;;  %980 = vrot.lane.b32.xlu1 %v1557_v11, %s1585_s25 }
0x1324   :  { %v979_v13 = vpop.permute.xlu1 %978  ;;  %v977_v15 = vpop.permute.xlu0 %976 }
0x1325   :  { %v982_v14 = vmul.f32 2.0, %v979_v13  ;;  %v984_v17 = vmul.f32 %v977_v15, %v913_v54 }
0x1327   :  { %v1282_v16 = vadd.f32 -1.0, %v982_v14 }
0x1328   :  { %v981_v21 = vpop.permute.xlu1 %980 }
0x1329   :  { %v985_v18 = vmul.f32 %v1557_v11, %v1282_v16 }
0x132b   :  { %v986_v19 = vadd.f32 %v985_v18, %v984_v17 }
0x132d   :  { %1558 = vtanh.f32 %v986_v19 }
0x1335   :  { %v994_v24 = vpop.permute.xlu0 %993 }
0x1336   :  { %v996_v25 = vmul.f32 %v1642_v5, %v994_v24 }
0x1337   :  { %v1559_v20 = vpop.eup %1558 }
0x1338   :  { %v988_v22 = vmul.f32 %v1559_v20, %v981_v21  ;;  %v997_v26 = vadd.f32 %v1648_v8, %v996_v25 }
0x133a   :  { %v998_v23 = vpack.c.bf16 %v988_v22, %v988_v22 }
0x133c   :  { %1454 = vmatmul.mubr.msk.bf16.vlgmr.msra.gmra.mrb[24].mxu1 %vm49_vm1, %v998_v23 }
0x133d   :  { %1466 = vmatpush3.bf16.msra.mxu1 %v1610_v1  ;;  %1469 = vmatprep.mubr.msk.bf16.mxu1 %vm1581_vm0, %v1580_v0 }
0x133e   :  { %1467 = vmatprep.subr.bf16.mxu1 %v1580_v0  ;;  %v1287_v0 = vld [vmem:[%s1878_s0 + $0x70] sm:$0xff] }
0x1341   :  { %1468 = vmatpush3.bf16.msra.mxu1 %v1619_v3 }
0x140f   :  { %v1036_v27 = vpop.f32.mrb[24].mxu1 }
0x1410   :  { %v1042_v28 = vadd.f32 %v1036_v27, %v997_v26  ;;  %v1455_v29 = vpop.f32.mrb[25].mxu1 }
0x1411   :  { %v1039_v30 = vpop.f32.mrb[26].mxu1 }
0x1412   :  { %v1285_v31 = vmul.f32 -1.442695, %v1042_v28  ;;  %v1456_v32 = vpop.f32.mrb[27].mxu1 }
0x1414   :  { %1560 = vpow2.f32 %v1285_v31  ;;  %v1295_v31 = vld [vmem:[%s1879_s2 + $0x2] ss:$0 sm:$0xff] }
0x141e   :  { %v1561_v1 = vpop.eup %1560 }
0x141f   :  { %v1046_v33 = vadd.f32 1.0, %v1561_v1 }
0x1421   :  { %1562 = vrcp.f32 %v1046_v33 }
0x142b   :  { %v1563_v34 = vpop.eup %1562 }
0x142c   :  { %1049 = vrot.lane.b32.xlu0 %v1563_v34, %s1583_s21  ;;  %1051 = vrot.lane.b32.xlu1 %v1563_v34, %s1584_s22 }
0x1430   :  { %1066 = vperm.xlu0 %1479, %v1287_v0   ;;  %1053 = vrot.lane.b32.xlu1 %v1563_v34, %s1585_s25 }
0x149e   :  { %v1052_v3 = vpop.permute.xlu1 %1051  ;;  %v1050_v8 = vpop.permute.xlu0 %1049 }
0x149f   :  { %v1055_v5 = vmul.f32 2.0, %v1052_v3  ;;  %v1057_v36 = vmul.f32 %v1050_v8, %v986_v19 }
0x14a1   :  { %v1286_v35 = vadd.f32 -1.0, %v1055_v5 }
0x14a2   :  { %v1054_v40 = vpop.permute.xlu1 %1053 }
0x14a3   :  { %v1058_v37 = vmul.f32 %v1563_v34, %v1286_v35  ;;  %v1296_v34 = vld [vmem:[%s1879_s2 + $0x3] ss:$0 sm:$0xff] }
0x14a5   :  { %v1059_v38 = vadd.f32 %v1058_v37, %v1057_v36 }
0x14a7   :  { %1564 = vtanh.f32 %v1059_v38 }
0x14af   :  { %v1067_v43 = vpop.permute.xlu0 %1066 }
0x14b0   :  { %v1069_v45 = vmul.f32 %v1578_v44, %v1067_v43 }
0x14b1   :  { %v1565_v39 = vpop.eup %1564 }
0x14b2   :  { %v1061_v41 = vmul.f32 %v1565_v39, %v1054_v40  ;;  %v1070_v47 = vadd.f32 %v1579_v46, %v1069_v45 }
0x14b4   :  { %v1071_v42 = vpack.c.bf16 %v1061_v41, %v1061_v41 }
0x14b6   :  { %1462 = vmatmul.mubr.msk.bf16.vlgmr.msra.gmra.mrb[28].mxu0 %vm49_vm1, %v1071_v42 }
0x1589   :  { %v1109_v48 = vpop.f32.mrb[28].mxu0 }
0x158a   :  { %v1115_v49 = vadd.f32 %v1109_v48, %v1070_v47  ;;  %v1463_v50 = vpop.f32.mrb[29].mxu0 }
0x158b   :  { %v1112_v51 = vpop.f32.mrb[30].mxu0 }
0x158c   :  { %v1289_v52 = vmul.f32 -1.442695, %v1115_v49  ;;  %v1464_v53 = vpop.f32.mrb[31].mxu0 }
0x158e   :  { %1566 = vpow2.f32 %v1289_v52 }
0x1598   :  { %v1567_v54 = vpop.eup %1566 }
0x1599   :  { %v1119_v55 = vadd.f32 1.0, %v1567_v54 }
0x159b   :  { %1568 = vrcp.f32 %v1119_v55 }
0x15a5   :  { %v1569_v56 = vpop.eup %1568 }
0x15a6   :  { %1122 = vrot.lane.b32.xlu0 %v1569_v56, %s1583_s21  ;;  %1124 = vrot.lane.b32.xlu1 %v1569_v56, %s1584_s22 }
0x15aa   :  { %1139 = vperm.xlu0 %1479, %v1291_v57   ;;  %1126 = vrot.lane.b32.xlu1 %v1569_v56, %s1585_s25 }
0x1618   :  { %v1125_v58 = vpop.permute.xlu1 %1124  ;;  %v1123_v60 = vpop.permute.xlu0 %1122 }
0x1619   :  { %v1128_v59 = vmul.f32 2.0, %v1125_v58  ;;  %v1130_v62 = vmul.f32 %v1123_v60, %v1059_v38 }
0x161b   :  { %v1290_v61 = vadd.f32 -1.0, %v1128_v59 }
0x161c   :  { %v1127_v6 = vpop.permute.xlu1 %1126 }
0x161d   :  { %v1131_v63 = vmul.f32 %v1569_v56, %v1290_v61 }
0x161f   :  { %v1132_v2 = vadd.f32 %v1131_v63, %v1130_v62 }
0x1621   :  { %1570 = vtanh.f32 %v1132_v2 }
0x1629   :  { %v1140_v10 = vpop.permute.xlu0 %1139 }
0x162a   :  { %v1142_v11 = vmul.f32 %v1578_v44, %v1140_v10 }
0x162b   :  { %v1571_v4 = vpop.eup %1570 }
0x162c   :  { %v1134_v7 = vmul.f32 %v1571_v4, %v1127_v6  ;;  %v1143_v12 = vadd.f32 %v1579_v46, %v1142_v11 }
0x162e   :  { %v1144_v9 = vpack.c.bf16 %v1134_v7, %v1134_v7 }
0x1630   :  { %1470 = vmatmul.mubr.msk.bf16.vlgmr.msra.gmra.mrb[28].mxu1 %vm49_vm1, %v1144_v9 }
0x1703   :  { %v1182_v13 = vpop.f32.mrb[28].mxu1 }
0x1704   :  { %v1188_v14 = vadd.f32 %v1182_v13, %v1143_v12  ;;  %v1471_v15 = vpop.f32.mrb[29].mxu1 }
0x1705   :  { %v1185_v16 = vpop.f32.mrb[30].mxu1 }
0x1706   :  { %v1293_v17 = vmul.f32 -1.442695, %v1188_v14  ;;  %v1472_v18 = vpop.f32.mrb[31].mxu1 }
0x1708   :  { %1572 = vpow2.f32 %v1293_v17 }
0x1712   :  { %v1573_v19 = vpop.eup %1572 }
0x1713   :  { %v1192_v20 = vadd.f32 1.0, %v1573_v19 }
0x1715   :  { %1574 = vrcp.f32 %v1192_v20 }
0x171f   :  { %v1575_v21 = vpop.eup %1574 }
0x1720   :  { %1195 = vrot.lane.b32.xlu0 %v1575_v21, %s1583_s21  ;;  %1197 = vrot.lane.b32.xlu1 %v1575_v21, %s1584_s22 }
0x1724   :  { %1199 = vrot.lane.b32.xlu1 %v1575_v21, %s1585_s25 }
0x1792   :  { %v1198_v22 = vpop.permute.xlu1 %1197  ;;  %v1196_v24 = vpop.permute.xlu0 %1195 }
0x1793   :  { %v1201_v23 = vmul.f32 2.0, %v1198_v22  ;;  %v1203_v26 = vmul.f32 %v1196_v24, %v1132_v2 }
0x1795   :  { %v1294_v25 = vadd.f32 -1.0, %v1201_v23 }
0x1796   :  { %v1200_v30 = vpop.permute.xlu1 %1199 }
0x1797   :  { %v1204_v27 = vmul.f32 %v1575_v21, %v1294_v25 }
0x1799   :  { %v1205_v28 = vadd.f32 %v1204_v27, %v1203_v26 }
0x179b   :  { %1576 = vtanh.f32 %v1205_v28 }
0x17a5   :  { %v1577_v29 = vpop.eup %1576 }
0x17a6   :  { %v1207_v32 = vmul.f32 %v1577_v29, %v1200_v30 }
0x17a8   :  { %v1214_v1 = vmul.f32 %v1295_v31, %v1207_v32 }
0x17aa   :  { %v1215_v33 = vsel %vm49_vm1, %v1214_v1, 0.0 }
0x17ab   :  { %1216 = vadd.xlane.f32.xlu0 %v1215_v33 }
0x1838   :  { %v1217_v0 = vpop.xlane.xlu0 %1216 }
0x1839   :  { %v1222_v3 = vadd.f32 %v1296_v34, %v1217_v0 }
0x183b   :  { %1224 = vst.msk [vmem:[%s1880_s3] sm:$0xff] %vm1223_vm2, %v1222_v3 }

</bundles_post_ra>
